<compile_context>
chip_gen: v5e
topology: v5e:2x2
jax: 0.10.0
libtpu: 0.0.40
codegen_flags: <defaults>
</compile_context>

<pallas_src>
import jax
import jax.numpy as jnp
from jax.experimental import pallas as pl
from jax.experimental.pallas import tpu as pltpu

# ----------------------------- configuration ------------------------------ #
B = 2                          # batch
COOR_DIM = 2                   # d
MAX_LEN = 32                   # T
LEN_SNI = 8                    # L  (len_sni_temp)
NUM_SNI = MAX_LEN // LEN_SNI   # S  = snippets per trajectory
NUM_SNI_TEMP = 16              # K  (num_sni_temp)
NUM_SNI_PARAM = 5              # P  (pres, scale, tx, ty, theta)
NUM_SEG_TEMP = 8               # M  (num_seg_temp)
NUM_SEG_PARAM = 7              # Q  = 1 + coor_dim*(coor_dim+1)
NUM_CLASSES = 10
ENC_HIDDEN = 64                # snippet-encoder hidden
LSTM_HIDDEN = 32               # H ; 4*H = 128 -> lane-dense stacked gates
FC_HIDDEN = 32
CONSTRAIN_SCALE = 1.0          # input_type == 'coors'
CONSTRAIN_TRANS = 1.5

_F32 = jnp.float32
S, K, P = NUM_SNI, NUM_SNI_TEMP, NUM_SNI_PARAM
M, Q = NUM_SEG_TEMP, NUM_SEG_PARAM
H, L = LSTM_HIDDEN, LEN_SNI
T = MAX_LEN
CH = COOR_DIM + 1              # (scale, x, y)
SB = S * B                     # snippet rows (s-major: row = s*B + b)
SK = S * K

# ---- packed parameter slab row map (every block starts on an 8-row boundary) ---- #
ROW_ENC_W1 = 0                             # [L*d, ENC_HIDDEN]  = [16, 64]
ROW_BIAS = ROW_ENC_W1 + L * COOR_DIM       # 8 rows of packed biases
ROW_ENC_W2 = ROW_BIAS + 8                  # [ENC_HIDDEN, P*K]  = [64, 80]
ROW_LSTM_WX = ROW_ENC_W2 + ENC_HIDDEN      # [P*K, 4H]          = [80, 128]
ROW_LSTM_WH = ROW_LSTM_WX + P * K          # [H, 4H]            = [32, 128]
ROW_FC_W1 = ROW_LSTM_WH + H                # [H, FC]            = [32, 32]
ROW_FC_W2 = ROW_FC_W1 + H                  # [FC, Q*M]          = [32, 56]
ROW_CLS_W = ROW_FC_W2 + FC_HIDDEN          # [M, C]             = [8, 10]
ROW_SNI_RHS = ROW_CLS_W + M                # [6*K, 4*L]         = [96, 32]
ROW_XSEG_RHS = ROW_SNI_RHS + 6 * K         # [6*SK, 4*T]        = [384, 128]
PSLAB_ROWS = ROW_XSEG_RHS + 6 * SK         # 752

# ---- output slab row map (one lane-dense [32, 384] slab) ---- #
OUT_RAW = 0            # [SB, P*K]       raw snippet params
OUT_TRANS = 8          # [SB, P*K]       constrained snippet params
OUT_DEC_SNI = 16       # [SB, CH*L]      decoded snippet coords (scale|x|y)
OUT_POSE = 24          # [B, P*SK]       segment-predicted poses (pres|scale|tx|ty|th)
OUT_XSEG = OUT_POSE + B        # [B, CH*T] decoded segment coords (scale|x|y)
OUT_SMALL = OUT_XSEG + B       # [B, Q*M + M + C]  segraw | seg_pres | logits
OUT_ROWS = 32
OUT_LANES = 384
SMALL_W = Q * M + M + NUM_CLASSES


def _vmem():
    return pl.BlockSpec(memory_space=pltpu.MemorySpace.VMEM)


# ------------------------------ fused kernel ------------------------------- #
def mcae_fused_kernel(snips_ref, pslab_ref, seg_rhs_ref, out_ref):
    dot = lambda a, b: jnp.dot(a, b, preferred_element_type=_F32)

    # ---- parameter views: static, 8-row-aligned slices of the packed slab ---- #
    enc_w1 = pslab_ref[ROW_ENC_W1:ROW_ENC_W1 + L * COOR_DIM, 0:ENC_HIDDEN]
    bias_blk = pslab_ref[ROW_BIAS:ROW_BIAS + 8, :]
    enc_b1 = bias_blk[0:1, 0:ENC_HIDDEN]
    enc_b2 = bias_blk[1:2, 0:P * K]
    lstm_b = bias_blk[2:3, 0:4 * H]
    fc_b1 = bias_blk[3:4, 0:FC_HIDDEN]
    fc_b2 = bias_blk[4:5, 0:Q * M]
    cls_b = bias_blk[5:6, 0:NUM_CLASSES]
    enc_w2 = pslab_ref[ROW_ENC_W2:ROW_ENC_W2 + ENC_HIDDEN, 0:P * K]
    lstm_wx = pslab_ref[ROW_LSTM_WX:ROW_LSTM_WX + P * K, 0:4 * H]
    lstm_wh = pslab_ref[ROW_LSTM_WH:ROW_LSTM_WH + H, 0:4 * H]
    fc_w1 = pslab_ref[ROW_FC_W1:ROW_FC_W1 + H, 0:FC_HIDDEN]
    fc_w2 = pslab_ref[ROW_FC_W2:ROW_FC_W2 + FC_HIDDEN, 0:Q * M]
    cls_w = pslab_ref[ROW_CLS_W:ROW_CLS_W + M, 0:NUM_CLASSES]
    sni_rhs = pslab_ref[ROW_SNI_RHS:ROW_SNI_RHS + 6 * K, 0:4 * L]
    xseg_rhs = pslab_ref[ROW_XSEG_RHS:ROW_XSEG_RHS + 6 * SK, 0:4 * T]

    # ---- SnippetEncoder: shared per-snippet MLP -> raw capsule params -------- #
    h0 = jnp.maximum(dot(snips_ref[...], enc_w1) + enc_b1, 0.0)     # [SB, 64]
    raw = dot(h0, enc_w2) + enc_b2                                  # [SB, P*K]
    out_ref[OUT_RAW:OUT_RAW + SB, 0:P * K] = raw

    # ---- SnippetDecoder.transform_params (register resident, one store) ------ #
    pres = jax.nn.sigmoid(raw[:, 0:K])
    scale = CONSTRAIN_SCALE * jax.nn.sigmoid(raw[:, K:2 * K])
    tx = CONSTRAIN_TRANS * jnp.tanh(raw[:, 2 * K:3 * K])
    ty = CONSTRAIN_TRANS * jnp.tanh(raw[:, 3 * K:4 * K])
    th = jnp.pi * jnp.tanh(raw[:, 4 * K:5 * K])
    trans = jnp.concatenate([pres, scale, tx, ty, th], axis=-1)     # [SB, P*K]
    out_ref[OUT_TRANS:OUT_TRANS + SB, 0:P * K] = trans

    # ---- x_sni decode: ONE stacked dot (templates + row-sums + denom folded) -- #
    u = pres * scale
    lhs_sni = jnp.concatenate(
        [u * jnp.cos(th), u * jnp.sin(th), pres * tx, pres * ty, u, pres],
        axis=-1)                                                    # [SB, 6K]
    r_sni = dot(lhs_sni, sni_rhs)                                   # [SB, 4L] = [osc|x|y|den]
    inv_sni = 1.0 / (r_sni[:, 3 * L:3 * L + 1] + 1e-6)              # [SB, 1]
    out_ref[OUT_DEC_SNI:OUT_DEC_SNI + SB, 0:CH * L] = r_sni[:, 0:CH * L] * inv_sni

    # ---- SegmentEncoder: LSTM over snippets ----------------------------------- #
    # s-major rows -> the hoisted input projection gives contiguous per-step slices.
    xp = dot(trans, lstm_wx) + lstm_b                               # [SB, 4H]
    h = jnp.zeros((B, H), _F32)
    c = jnp.zeros((B, H), _F32)
    for s in range(S):                                              # S = 4, static unroll
        g = xp[s * B:(s + 1) * B, :] + dot(h, lstm_wh)              # [B, 4H]
        i_g = jax.nn.sigmoid(g[:, 0:H])
        f_g = jax.nn.sigmoid(g[:, H:2 * H])
        g_g = jnp.tanh(g[:, 2 * H:3 * H])
        o_g = jax.nn.sigmoid(g[:, 3 * H:4 * H])
        c = f_g * c + i_g * g_g
        h = o_g * jnp.tanh(c)

    # ---- SegmentEncoder FC head -> raw segment capsule params ----------------- #
    fh = jnp.maximum(dot(h, fc_w1) + fc_b1, 0.0)                    # [B, 32]
    segraw = dot(fh, fc_w2) + fc_b2                                 # [B, Q*M]

    # ---- SegmentDecoder: segment capsules -> snippet poses (ONE stacked dot) --- #
    seg_pres = jax.nn.sigmoid(segraw[:, 0:M])
    l00 = CONSTRAIN_SCALE * jnp.tanh(segraw[:, M:2 * M])
    l01 = CONSTRAIN_SCALE * jnp.tanh(segraw[:, 2 * M:3 * M])
    l10 = CONSTRAIN_SCALE * jnp.tanh(segraw[:, 3 * M:4 * M])
    l11 = CONSTRAIN_SCALE * jnp.tanh(segraw[:, 4 * M:5 * M])
    t0 = CONSTRAIN_TRANS * jnp.tanh(segraw[:, 5 * M:6 * M])
    t1 = CONSTRAIN_TRANS * jnp.tanh(segraw[:, 6 * M:7 * M])
    wseg = seg_pres / (jnp.sum(seg_pres, axis=-1, keepdims=True) + 1e-6)
    # TODO(synk): exact SegmentDecoder pose composition is not in the reference;
    # this composes the 2x3 affine with the (pre-activated) template poses
    # (scale via sqrt|det|, translation added, no rotation mixing).
    seg_scale = jnp.sqrt(jnp.abs(l00 * l11 - l01 * l10) + 1e-6)
    lhs_seg = jnp.concatenate(
        [wseg, wseg * seg_scale, wseg * l00, wseg * l01,
         wseg * l10, wseg * l11, wseg * t0, wseg * t1], axis=-1)    # [B, 8M]
    pose = dot(lhs_seg, seg_rhs_ref[...])                           # [B, P*SK] = [pres|scale|tx|ty|th]
    out_ref[OUT_POSE:OUT_POSE + B, 0:P * SK] = pose

    # ---- x_seg decode: block-diagonal templates, ONE dot -> [B, CH*T] ---------- #
    # TODO(synk): detach_template=True only affects gradients; forward is identical.
    p_pres = pose[:, 0:SK]
    p_scale = pose[:, SK:2 * SK]
    p_tx = pose[:, 2 * SK:3 * SK]
    p_ty = pose[:, 3 * SK:4 * SK]
    p_th = pose[:, 4 * SK:5 * SK]
    u2 = p_pres * p_scale
    lhs_xseg = jnp.concatenate(
        [u2 * jnp.cos(p_th), u2 * jnp.sin(p_th), p_pres * p_tx,
         p_pres * p_ty, u2, p_pres], axis=-1)                       # [B, 6*SK]
    r_seg = dot(lhs_xseg, xseg_rhs)                                 # [B, 4T] = [osc|x|y|den]
    inv_seg = 1.0 / (r_seg[:, 3 * T:4 * T] + 1e-6)                  # [B, T] per-snippet group
    xseg = jnp.concatenate([r_seg[:, 0:T] * inv_seg,
                            r_seg[:, T:2 * T] * inv_seg,
                            r_seg[:, 2 * T:3 * T] * inv_seg], axis=-1)
    out_ref[OUT_XSEG:OUT_XSEG + B, 0:CH * T] = xseg

    # ---- classifier (supervised=False: detach is forward-identity) ------------- #
    # TODO(synk): reference seg_cls consumes the constrained seg_pres (assumed).
    lgts = dot(seg_pres, cls_w) + cls_b                             # [B, C]
    out_ref[OUT_SMALL:OUT_SMALL + B, 0:SMALL_W] = jnp.concatenate(
        [segraw, seg_pres, lgts], axis=-1)


# ----------------------------- pallas_call wrapper -------------------------- #
def mcae_fused_call(pslab, seg_rhs, snips):
    return pl.pallas_call(
        mcae_fused_kernel,
        out_shape=jax.ShapeDtypeStruct((OUT_ROWS, OUT_LANES), _F32),
        in_specs=[_vmem(), _vmem(), _vmem()],
        out_specs=_vmem(),
    )(snips, pslab, seg_rhs)


# ------------------------------- parameters -------------------------------- #
def init_params(key):
    ks = jax.random.split(key, 12)
    nrm = lambda k, shape, s=0.1: (s * jax.random.normal(k, shape)).astype(_F32)
    zeros = lambda shape: jnp.zeros(shape, _F32)
    return {
        # SnippetEncoder (per-snippet MLP == conv1d kernel L, stride L)
        'enc_w1': nrm(ks[0], (LEN_SNI * COOR_DIM, ENC_HIDDEN)),
        'enc_b1': zeros((1, ENC_HIDDEN)),
        # columns are param-major ([P, K] flattened)
        'enc_w2': nrm(ks[1], (ENC_HIDDEN, P * K)),
        'enc_b2': zeros((1, P * K)),
        # SnippetDecoder templates: K snippet prototypes of length L
        'sni_temp': nrm(ks[2], (K, LEN_SNI, COOR_DIM), 0.5),
        # SegmentEncoder: LSTM gate weights stacked along output dim (4H = 128)
        'lstm_wx': nrm(ks[3], (P * K, 4 * H)),
        'lstm_wh': nrm(ks[4], (H, 4 * H)),
        'lstm_b': zeros((1, 4 * H)),
        'fc_w1': nrm(ks[5], (H, FC_HIDDEN)),
        'fc_b1': zeros((1, FC_HIDDEN)),
        # columns are param-major ([Q, M] flattened)
        'fc_w2': nrm(ks[6], (FC_HIDDEN, Q * M)),
        'fc_b2': zeros((1, Q * M)),
        # SegmentDecoder templates: per segment capsule, snippet-pose templates
        'seg_pres_temp': nrm(ks[7], (M, SK)),
        'seg_pose_temp': nrm(ks[8], (4, M, SK)),
        # seg_cls classifier
        'cls_w': nrm(ks[9], (M, NUM_CLASSES)),
        'cls_b': zeros((1, NUM_CLASSES)),
    }


def _block_diag(block, n):
    r, c = block.shape
    out = jnp.zeros((n * r, n * c), block.dtype)
    for i in range(n):
        out = out.at[i * r:(i + 1) * r, i * c:(i + 1) * c].set(block)
    return out


def prepare_params(p):
    """Param-only packing / transforms, done ONCE outside the per-forward path."""
    tmx = p['sni_temp'][..., 0]                    # [K, L]
    tmy = p['sni_temp'][..., 1]

    # x_sni decode RHS [6K, 4L]; column blocks: [osc | x | y | den]
    o_kl = jnp.ones((K, L), _F32)
    z_kl = jnp.zeros((K, L), _F32)
    sni_rhs = jnp.concatenate([
        jnp.concatenate([z_kl, tmx, tmy, z_kl], 1),      # u*cos(th)
        jnp.concatenate([z_kl, -tmy, tmx, z_kl], 1),     # u*sin(th)
        jnp.concatenate([z_kl, o_kl, z_kl, z_kl], 1),    # pres*tx   -> x translation
        jnp.concatenate([z_kl, z_kl, o_kl, z_kl], 1),    # pres*ty   -> y translation
        jnp.concatenate([o_kl, z_kl, z_kl, z_kl], 1),    # pres*scale-> scale channel
        jnp.concatenate([z_kl, z_kl, z_kl, o_kl], 1),    # pres      -> denominator
    ], 0)                                                # [96, 32]

    # x_seg decode RHS [6*SK, 4*T]: same structure with block-diagonal templates.
    txbd = _block_diag(tmx, S)                           # [SK, T]
    tybd = _block_diag(tmy, S)
    onbd = _block_diag(jnp.ones((K, L), _F32), S)
    zbd = jnp.zeros((SK, T), _F32)
    xseg_rhs = jnp.concatenate([
        jnp.concatenate([zbd, txbd, tybd, zbd], 1),
        jnp.concatenate([zbd, -tybd, txbd, zbd], 1),
        jnp.concatenate([zbd, onbd, zbd, zbd], 1),
        jnp.concatenate([zbd, zbd, onbd, zbd], 1),
        jnp.concatenate([onbd, zbd, zbd, zbd], 1),
        jnp.concatenate([zbd, zbd, zbd, onbd], 1),
    ], 0)                                                # [384, 128]

    # Segment caps -> poses RHS [8M, P*SK] with PRE-ACTIVATED templates (hoisted EUP work).
    pres_t = jax.nn.sigmoid(p['seg_pres_temp'])
    sc_t = CONSTRAIN_SCALE * jax.nn.sigmoid(p['seg_pose_temp'][0])
    tx_t = CONSTRAIN_TRANS * jnp.tanh(p['seg_pose_temp'][1])
    ty_t = CONSTRAIN_TRANS * jnp.tanh(p['seg_pose_temp'][2])
    th_t = jnp.pi * jnp.tanh(p['seg_pose_temp'][3])
    z = jnp.zeros((M, SK), _F32)
    o = jnp.ones((M, SK), _F32)
    seg_rhs = jnp.concatenate([
        jnp.concatenate([pres_t, z, z, z, th_t], 1),     # wseg
        jnp.concatenate([z, sc_t, z, z, z], 1),          # wseg * seg_scale
        jnp.concatenate([z, z, tx_t, z, z], 1),          # wseg * l00
        jnp.concatenate([z, z, ty_t, z, z], 1),          # wseg * l01
        jnp.concatenate([z, z, z, tx_t, z], 1),          # wseg * l10
        jnp.concatenate([z, z, z, ty_t, z], 1),          # wseg * l11
        jnp.concatenate([z, z, o, z, z], 1),             # wseg * t0 -> tx translation
        jnp.concatenate([z, z, z, o, z], 1),             # wseg * t1 -> ty translation
    ], 0)                                                # [64, 320]

    # 128-lane packed parameter slab.
    pslab = jnp.zeros((PSLAB_ROWS, 128), _F32)

    def put(slab, row, a):
        return slab.at[row:row + a.shape[0], :a.shape[1]].set(a)

    bias = jnp.zeros((8, 128), _F32)
    bias = bias.at[0, :ENC_HIDDEN].set(p['enc_b1'].reshape(-1))
    bias = bias.at[1, :P * K].set(p['enc_b2'].reshape(-1))
    bias = bias.at[2, :4 * H].set(p['lstm_b'].reshape(-1))
    bias = bias.at[3, :FC_HIDDEN].set(p['fc_b1'].reshape(-1))
    bias = bias.at[4, :Q * M].set(p['fc_b2'].reshape(-1))
    bias = bias.at[5, :NUM_CLASSES].set(p['cls_b'].reshape(-1))

    pslab = put(pslab, ROW_ENC_W1, p['enc_w1'])
    pslab = put(pslab, ROW_BIAS, bias)
    pslab = put(pslab, ROW_ENC_W2, p['enc_w2'])
    pslab = put(pslab, ROW_LSTM_WX, p['lstm_wx'])
    pslab = put(pslab, ROW_LSTM_WH, p['lstm_wh'])
    pslab = put(pslab, ROW_FC_W1, p['fc_w1'])
    pslab = put(pslab, ROW_FC_W2, p['fc_w2'])
    pslab = put(pslab, ROW_CLS_W, p['cls_w'])
    pslab = put(pslab, ROW_SNI_RHS, sni_rhs)
    pslab = put(pslab, ROW_XSEG_RHS, xseg_rhs)

    raw_seg_temp = jnp.transpose(p['seg_pose_temp'], (1, 2, 0)).reshape(M, S, K, 4)
    return {'pslab': pslab, 'seg_rhs': seg_rhs, 'raw_seg_temp': raw_seg_temp}


# --------------------------------- forward --------------------------------- #
def mcae_forward(prep, x):
    bsz, t_len, d = x.shape
    assert (bsz, t_len, d) == (B, MAX_LEN, COOR_DIM)

    # snippet rows in s-major order (row = s*B + b)
    snips = x.reshape(B, S, L * d).transpose(1, 0, 2).reshape(SB, L * d)

    out = mcae_fused_call(prep['pslab'], prep['seg_rhs'], snips)

    raw = out[OUT_RAW:OUT_RAW + SB, 0:P * K]
    trans = out[OUT_TRANS:OUT_TRANS + SB, 0:P * K]
    dec_sni = out[OUT_DEC_SNI:OUT_DEC_SNI + SB, 0:CH * L]
    pose = out[OUT_POSE:OUT_POSE + B, 0:P * SK]
    xseg = out[OUT_XSEG:OUT_XSEG + B, 0:CH * T]
    small = out[OUT_SMALL:OUT_SMALL + B, :]
    segraw = small[:, 0:Q * M]
    seg_pres = small[:, Q * M:Q * M + M]
    seg_lgts = small[:, Q * M + M:Q * M + M + NUM_CLASSES]

    # ---- final layouts (tiny, fused by XLA) -------------------------------- #
    sni_params = raw.reshape(S, B, P, K).transpose(1, 0, 3, 2)            # [B,S,K,P]
    sni_params_trans = trans.reshape(S, B, P, K).transpose(1, 0, 3, 2)    # [B,S,K,P]
    sni_pres = sni_params_trans[..., 0]                                   # [B,S,K]
    d_sni = dec_sni.reshape(S, B, CH, L).transpose(1, 0, 3, 2).reshape(B, T, CH)
    d_seg = xseg.reshape(B, CH, T).transpose(0, 2, 1)                     # [B,T,3]
    # compact_pose(pose): pose is already produced in compact (scale,tx,ty,theta) form
    sni_params_recons = pose.reshape(B, P, S, K).transpose(0, 2, 3, 1)    # [B,S,K,5]
    seg_params = segraw.reshape(B, Q, M).transpose(0, 2, 1)               # [B,M,Q]

    return {
        'raw_seg_temp': prep['raw_seg_temp'],
        'x_sni': d_sni[..., 1:],
        'x_sni_scale': d_sni[..., 0:1],
        'sni_pres': sni_pres,
        'sni_params': sni_params,
        'x_seg': d_seg[..., 1:],
        'x_seg_scale': d_seg[..., 0:1],
        'seg_params': seg_params,
        'seg_pres': seg_pres,
        'seg_lgts': seg_lgts,
        'sni_params_trans': sni_params_trans,
        'sni_params_recons': sni_params_recons,
        'x': x,
    }


# ----------------------------------- main ----------------------------------- #
if __name__ == "__main__":
    key = jax.random.PRNGKey(0)
    key_p, key_x = jax.random.split(key)
    params = init_params(key_p)
    prep = prepare_params(params)            # param-only packing, done once
    x = jax.random.normal(key_x, (B, MAX_LEN, COOR_DIM), dtype=_F32)

    fwd = jax.jit(mcae_forward)
    results = fwd(prep, x)
    results = jax.block_until_ready(results)
    results['len_sni_temp'] = LEN_SNI        # static config passthrough

    print("KERNEL_OK")
</pallas_src>

<mosaic_0001>
module attributes {stable_mosaic.version = 11 : i64} {
  func.func @mcae_fused_kernel(%arg0: memref<8x16xf32, #tpu.memory_space<vmem>>, %arg1: memref<752x128xf32, #tpu.memory_space<vmem>>, %arg2: memref<64x320xf32, #tpu.memory_space<vmem>>, %arg3: memref<32x384xf32, #tpu.memory_space<vmem>>) attributes {dimension_semantics = [], scalar_prefetch = 0 : i64, scratch_operands = 0 : i64, tpu.core_type = #tpu.core_type<tc>} {
    %c0 = arith.constant 0 : index
    %c0_0 = arith.constant 0 : index
    %0 = vector.load %arg1[%c0, %c0_0] : memref<752x128xf32, #tpu.memory_space<vmem>>, vector<16x64xf32>
    %c16 = arith.constant 16 : index
    %c0_1 = arith.constant 0 : index
    %1 = vector.load %arg1[%c16, %c0_1] : memref<752x128xf32, #tpu.memory_space<vmem>>, vector<8x128xf32>
    %2 = vector.extract_strided_slice %1 {offsets = [0, 0], sizes = [1, 64], strides = [1, 1]} : vector<8x128xf32> to vector<1x64xf32>
    %3 = vector.extract_strided_slice %1 {offsets = [1, 0], sizes = [1, 80], strides = [1, 1]} : vector<8x128xf32> to vector<1x80xf32>
    %4 = vector.extract_strided_slice %1 {offsets = [2, 0], sizes = [1, 128], strides = [1, 1]} : vector<8x128xf32> to vector<1x128xf32>
    %5 = vector.extract_strided_slice %1 {offsets = [3, 0], sizes = [1, 32], strides = [1, 1]} : vector<8x128xf32> to vector<1x32xf32>
    %6 = vector.extract_strided_slice %1 {offsets = [4, 0], sizes = [1, 56], strides = [1, 1]} : vector<8x128xf32> to vector<1x56xf32>
    %7 = vector.extract_strided_slice %1 {offsets = [5, 0], sizes = [1, 10], strides = [1, 1]} : vector<8x128xf32> to vector<1x10xf32>
    %c24 = arith.constant 24 : index
    %c0_2 = arith.constant 0 : index
    %8 = vector.load %arg1[%c24, %c0_2] : memref<752x128xf32, #tpu.memory_space<vmem>>, vector<64x80xf32>
    %c88 = arith.constant 88 : index
    %c0_3 = arith.constant 0 : index
    %9 = vector.load %arg1[%c88, %c0_3] : memref<752x128xf32, #tpu.memory_space<vmem>>, vector<80x128xf32>
    %c168 = arith.constant 168 : index
    %c0_4 = arith.constant 0 : index
    %10 = vector.load %arg1[%c168, %c0_4] : memref<752x128xf32, #tpu.memory_space<vmem>>, vector<32x128xf32>
    %c200 = arith.constant 200 : index
    %c0_5 = arith.constant 0 : index
    %11 = vector.load %arg1[%c200, %c0_5] : memref<752x128xf32, #tpu.memory_space<vmem>>, vector<32x32xf32>
    %c232 = arith.constant 232 : index
    %c0_6 = arith.constant 0 : index
    %12 = vector.load %arg1[%c232, %c0_6] : memref<752x128xf32, #tpu.memory_space<vmem>>, vector<32x56xf32>
    %c264 = arith.constant 264 : index
    %c0_7 = arith.constant 0 : index
    %13 = vector.load %arg1[%c264, %c0_7] : memref<752x128xf32, #tpu.memory_space<vmem>>, vector<8x10xf32>
    %c272 = arith.constant 272 : index
    %c0_8 = arith.constant 0 : index
    %14 = vector.load %arg1[%c272, %c0_8] : memref<752x128xf32, #tpu.memory_space<vmem>>, vector<96x32xf32>
    %c368 = arith.constant 368 : index
    %c0_9 = arith.constant 0 : index
    %15 = vector.load %arg1[%c368, %c0_9] : memref<752x128xf32, #tpu.memory_space<vmem>>, vector<384x128xf32>
    %c0_10 = arith.constant 0 : index
    %c0_11 = arith.constant 0 : index
    %16 = vector.load %arg0[%c0_10, %c0_11] : memref<8x16xf32, #tpu.memory_space<vmem>>, vector<8x16xf32>
    %cst = arith.constant dense<0.000000e+00> : vector<8x64xf32>
    %17 = tpu.matmul %16, %0, %cst {dimension_numbers = #tpu.dot_dimension_numbers<[1], [0], [0], [1], [0, 0, 1, 1], [], []>} : vector<8x16xf32>, vector<16x64xf32>, vector<8x64xf32> -> vector<8x64xf32>
    %18 = vector.broadcast %2 : vector<1x64xf32> to vector<8x64xf32>
    %19 = arith.addf %17, %18 : vector<8x64xf32>
    %cst_12 = arith.constant 0.000000e+00 : f32
    %20 = vector.broadcast %cst_12 : f32 to vector<8x64xf32>
    %21 = arith.maximumf %19, %20 : vector<8x64xf32>
    %cst_13 = arith.constant dense<0.000000e+00> : vector<8x80xf32>
    %22 = tpu.matmul %21, %8, %cst_13 {dimension_numbers = #tpu.dot_dimension_numbers<[1], [0], [0], [1], [0, 0, 1, 1], [], []>} : vector<8x64xf32>, vector<64x80xf32>, vector<8x80xf32> -> vector<8x80xf32>
    %23 = vector.broadcast %3 : vector<1x80xf32> to vector<8x80xf32>
    %24 = arith.addf %22, %23 : vector<8x80xf32>
    %c0_14 = arith.constant 0 : index
    %c0_15 = arith.constant 0 : index
    %25 = vector.load %arg3[%c0_14, %c0_15] : memref<32x384xf32, #tpu.memory_space<vmem>>, vector<8x80xf32>
    tpu.vector_store %arg3[%c0_14, %c0_15], %24 {strides = array<i32>} : memref<32x384xf32, #tpu.memory_space<vmem>>, vector<8x80xf32>,
    %26 = vector.extract_strided_slice %24 {offsets = [0, 0], sizes = [8, 16], strides = [1, 1]} : vector<8x80xf32> to vector<8x16xf32>
    %27 = arith.negf %26 : vector<8x16xf32>
    %28 = math.exp %27 : vector<8x16xf32>
    %cst_16 = arith.constant 1.000000e+00 : f32
    %29 = vector.broadcast %cst_16 : f32 to vector<8x16xf32>
    %30 = arith.addf %29, %28 : vector<8x16xf32>
    %31 = arith.divf %29, %30 : vector<8x16xf32>
    %32 = vector.extract_strided_slice %24 {offsets = [0, 16], sizes = [8, 16], strides = [1, 1]} : vector<8x80xf32> to vector<8x16xf32>
    %33 = arith.negf %32 : vector<8x16xf32>
    %34 = math.exp %33 : vector<8x16xf32>
    %cst_17 = arith.constant 1.000000e+00 : f32
    %35 = vector.broadcast %cst_17 : f32 to vector<8x16xf32>
    %36 = arith.addf %35, %34 : vector<8x16xf32>
    %37 = arith.divf %35, %36 : vector<8x16xf32>
    %cst_18 = arith.constant 1.000000e+00 : f32
    %38 = vector.broadcast %cst_18 : f32 to vector<8x16xf32>
    %39 = arith.mulf %38, %37 : vector<8x16xf32>
    %40 = vector.extract_strided_slice %24 {offsets = [0, 32], sizes = [8, 16], strides = [1, 1]} : vector<8x80xf32> to vector<8x16xf32>
    %41 = math.tanh %40 : vector<8x16xf32>
    %cst_19 = arith.constant 1.500000e+00 : f32
    %42 = vector.broadcast %cst_19 : f32 to vector<8x16xf32>
    %43 = arith.mulf %42, %41 : vector<8x16xf32>
    %44 = vector.extract_strided_slice %24 {offsets = [0, 48], sizes = [8, 16], strides = [1, 1]} : vector<8x80xf32> to vector<8x16xf32>
    %45 = math.tanh %44 : vector<8x16xf32>
    %cst_20 = arith.constant 1.500000e+00 : f32
    %46 = vector.broadcast %cst_20 : f32 to vector<8x16xf32>
    %47 = arith.mulf %46, %45 : vector<8x16xf32>
    %48 = vector.extract_strided_slice %24 {offsets = [0, 64], sizes = [8, 16], strides = [1, 1]} : vector<8x80xf32> to vector<8x16xf32>
    %49 = math.tanh %48 : vector<8x16xf32>
    %cst_21 = arith.constant 3.14159274 : f32
    %50 = vector.broadcast %cst_21 : f32 to vector<8x16xf32>
    %51 = arith.mulf %50, %49 : vector<8x16xf32>
    %52 = tpu.concatenate %31, %39, %43, %47, %51 in 1 : vector<8x16xf32>, vector<8x16xf32>, vector<8x16xf32>, vector<8x16xf32>, vector<8x16xf32> -> vector<8x80xf32>
    %c8 = arith.constant 8 : index
    %c0_22 = arith.constant 0 : index
    %53 = vector.load %arg3[%c8, %c0_22] : memref<32x384xf32, #tpu.memory_space<vmem>>, vector<8x80xf32>
    tpu.vector_store %arg3[%c8, %c0_22], %52 {strides = array<i32>} : memref<32x384xf32, #tpu.memory_space<vmem>>, vector<8x80xf32>,
    %54 = arith.mulf %31, %39 : vector<8x16xf32>
    %55 = math.cos %51 : vector<8x16xf32>
    %56 = arith.mulf %54, %55 : vector<8x16xf32>
    %57 = math.sin %51 : vector<8x16xf32>
    %58 = arith.mulf %54, %57 : vector<8x16xf32>
    %59 = arith.mulf %31, %43 : vector<8x16xf32>
    %60 = arith.mulf %31, %47 : vector<8x16xf32>
    %61 = tpu.concatenate %56, %58, %59, %60, %54, %31 in 1 : vector<8x16xf32>, vector<8x16xf32>, vector<8x16xf32>, vector<8x16xf32>, vector<8x16xf32>, vector<8x16xf32> -> vector<8x96xf32>
    %cst_23 = arith.constant dense<0.000000e+00> : vector<8x32xf32>
    %62 = tpu.matmul %61, %14, %cst_23 {dimension_numbers = #tpu.dot_dimension_numbers<[1], [0], [0], [1], [0, 0, 1, 1], [], []>} : vector<8x96xf32>, vector<96x32xf32>, vector<8x32xf32> -> vector<8x32xf32>
    %63 = vector.extract_strided_slice %62 {offsets = [0, 24], sizes = [8, 1], strides = [1, 1]} : vector<8x32xf32> to vector<8x1xf32>
    %cst_24 = arith.constant 9.99999997E-7 : f32
    %64 = vector.broadcast %cst_24 : f32 to vector<8x1xf32>
    %65 = arith.addf %63, %64 : vector<8x1xf32>
    %cst_25 = arith.constant 1.000000e+00 : f32
    %66 = vector.broadcast %cst_25 : f32 to vector<8x1xf32>
    %67 = arith.divf %66, %65 : vector<8x1xf32>
    %68 = vector.extract_strided_slice %62 {offsets = [0, 0], sizes = [8, 24], strides = [1, 1]} : vector<8x32xf32> to vector<8x24xf32>
    %69 = vector.broadcast %67 : vector<8x1xf32> to vector<8x24xf32>
    %70 = arith.mulf %68, %69 : vector<8x24xf32>
    %c16_26 = arith.constant 16 : index
    %c0_27 = arith.constant 0 : index
    %71 = vector.load %arg3[%c16_26, %c0_27] : memref<32x384xf32, #tpu.memory_space<vmem>>, vector<8x24xf32>
    tpu.vector_store %arg3[%c16_26, %c0_27], %70 {strides = array<i32>} : memref<32x384xf32, #tpu.memory_space<vmem>>, vector<8x24xf32>,
    %cst_28 = arith.constant dense<0.000000e+00> : vector<8x128xf32>
    %72 = tpu.matmul %52, %9, %cst_28 {dimension_numbers = #tpu.dot_dimension_numbers<[1], [0], [0], [1], [0, 0, 1, 1], [], []>} : vector<8x80xf32>, vector<80x128xf32>, vector<8x128xf32> -> vector<8x128xf32>
    %73 = vector.broadcast %4 : vector<1x128xf32> to vector<8x128xf32>
    %74 = arith.addf %72, %73 : vector<8x128xf32>
    %cst_29 = arith.constant 0.000000e+00 : f32
    %75 = vector.broadcast %cst_29 : f32 to vector<2x32xf32>
    %cst_30 = arith.constant 0.000000e+00 : f32
    %76 = vector.broadcast %cst_30 : f32 to vector<2x32xf32>
    %77 = vector.extract_strided_slice %74 {offsets = [0, 0], sizes = [2, 128], strides = [1, 1]} : vector<8x128xf32> to vector<2x128xf32>
    %cst_31 = arith.constant dense<0.000000e+00> : vector<2x128xf32>
    %78 = tpu.matmul %75, %10, %cst_31 {dimension_numbers = #tpu.dot_dimension_numbers<[1], [0], [0], [1], [0, 0, 1, 1], [], []>} : vector<2x32xf32>, vector<32x128xf32>, vector<2x128xf32> -> vector<2x128xf32>
    %79 = arith.addf %77, %78 : vector<2x128xf32>
    %80 = vector.extract_strided_slice %79 {offsets = [0, 0], sizes = [2, 32], strides = [1, 1]} : vector<2x128xf32> to vector<2x32xf32>
    %81 = arith.negf %80 : vector<2x32xf32>
    %82 = math.exp %81 : vector<2x32xf32>
    %cst_32 = arith.constant 1.000000e+00 : f32
    %83 = vector.broadcast %cst_32 : f32 to vector<2x32xf32>
    %84 = arith.addf %83, %82 : vector<2x32xf32>
    %85 = arith.divf %83, %84 : vector<2x32xf32>
    %86 = vector.extract_strided_slice %79 {offsets = [0, 32], sizes = [2, 32], strides = [1, 1]} : vector<2x128xf32> to vector<2x32xf32>
    %87 = arith.negf %86 : vector<2x32xf32>
    %88 = math.exp %87 : vector<2x32xf32>
    %cst_33 = arith.constant 1.000000e+00 : f32
    %89 = vector.broadcast %cst_33 : f32 to vector<2x32xf32>
    %90 = arith.addf %89, %88 : vector<2x32xf32>
    %91 = arith.divf %89, %90 : vector<2x32xf32>
    %92 = vector.extract_strided_slice %79 {offsets = [0, 64], sizes = [2, 32], strides = [1, 1]} : vector<2x128xf32> to vector<2x32xf32>
    %93 = math.tanh %92 : vector<2x32xf32>
    %94 = vector.extract_strided_slice %79 {offsets = [0, 96], sizes = [2, 32], strides = [1, 1]} : vector<2x128xf32> to vector<2x32xf32>
    %95 = arith.negf %94 : vector<2x32xf32>
    %96 = math.exp %95 : vector<2x32xf32>
    %cst_34 = arith.constant 1.000000e+00 : f32
    %97 = vector.broadcast %cst_34 : f32 to vector<2x32xf32>
    %98 = arith.addf %97, %96 : vector<2x32xf32>
    %99 = arith.divf %97, %98 : vector<2x32xf32>
    %100 = arith.mulf %91, %76 : vector<2x32xf32>
    %101 = arith.mulf %85, %93 : vector<2x32xf32>
    %102 = arith.addf %100, %101 : vector<2x32xf32>
    %103 = math.tanh %102 : vector<2x32xf32>
    %104 = arith.mulf %99, %103 : vector<2x32xf32>
    %105 = vector.extract_strided_slice %74 {offsets = [2, 0], sizes = [2, 128], strides = [1, 1]} : vector<8x128xf32> to vector<2x128xf32>
    %cst_35 = arith.constant dense<0.000000e+00> : vector<2x128xf32>
    %106 = tpu.matmul %104, %10, %cst_35 {dimension_numbers = #tpu.dot_dimension_numbers<[1], [0], [0], [1], [0, 0, 1, 1], [], []>} : vector<2x32xf32>, vector<32x128xf32>, vector<2x128xf32> -> vector<2x128xf32>
    %107 = arith.addf %105, %106 : vector<2x128xf32>
    %108 = vector.extract_strided_slice %107 {offsets = [0, 0], sizes = [2, 32], strides = [1, 1]} : vector<2x128xf32> to vector<2x32xf32>
    %109 = arith.negf %108 : vector<2x32xf32>
    %110 = math.exp %109 : vector<2x32xf32>
    %cst_36 = arith.constant 1.000000e+00 : f32
    %111 = vector.broadcast %cst_36 : f32 to vector<2x32xf32>
    %112 = arith.addf %111, %110 : vector<2x32xf32>
    %113 = arith.divf %111, %112 : vector<2x32xf32>
    %114 = vector.extract_strided_slice %107 {offsets = [0, 32], sizes = [2, 32], strides = [1, 1]} : vector<2x128xf32> to vector<2x32xf32>
    %115 = arith.negf %114 : vector<2x32xf32>
    %116 = math.exp %115 : vector<2x32xf32>
    %cst_37 = arith.constant 1.000000e+00 : f32
    %117 = vector.broadcast %cst_37 : f32 to vector<2x32xf32>
    %118 = arith.addf %117, %116 : vector<2x32xf32>
    %119 = arith.divf %117, %118 : vector<2x32xf32>
    %120 = vector.extract_strided_slice %107 {offsets = [0, 64], sizes = [2, 32], strides = [1, 1]} : vector<2x128xf32> to vector<2x32xf32>
    %121 = math.tanh %120 : vector<2x32xf32>
    %122 = vector.extract_strided_slice %107 {offsets = [0, 96], sizes = [2, 32], strides = [1, 1]} : vector<2x128xf32> to vector<2x32xf32>
    %123 = arith.negf %122 : vector<2x32xf32>
    %124 = math.exp %123 : vector<2x32xf32>
    %cst_38 = arith.constant 1.000000e+00 : f32
    %125 = vector.broadcast %cst_38 : f32 to vector<2x32xf32>
    %126 = arith.addf %125, %124 : vector<2x32xf32>
    %127 = arith.divf %125, %126 : vector<2x32xf32>
    %128 = arith.mulf %119, %102 : vector<2x32xf32>
    %129 = arith.mulf %113, %121 : vector<2x32xf32>
    %130 = arith.addf %128, %129 : vector<2x32xf32>
    %131 = math.tanh %130 : vector<2x32xf32>
    %132 = arith.mulf %127, %131 : vector<2x32xf32>
    %133 = vector.extract_strided_slice %74 {offsets = [4, 0], sizes = [2, 128], strides = [1, 1]} : vector<8x128xf32> to vector<2x128xf32>
    %cst_39 = arith.constant dense<0.000000e+00> : vector<2x128xf32>
    %134 = tpu.matmul %132, %10, %cst_39 {dimension_numbers = #tpu.dot_dimension_numbers<[1], [0], [0], [1], [0, 0, 1, 1], [], []>} : vector<2x32xf32>, vector<32x128xf32>, vector<2x128xf32> -> vector<2x128xf32>
    %135 = arith.addf %133, %134 : vector<2x128xf32>
    %136 = vector.extract_strided_slice %135 {offsets = [0, 0], sizes = [2, 32], strides = [1, 1]} : vector<2x128xf32> to vector<2x32xf32>
    %137 = arith.negf %136 : vector<2x32xf32>
    %138 = math.exp %137 : vector<2x32xf32>
    %cst_40 = arith.constant 1.000000e+00 : f32
    %139 = vector.broadcast %cst_40 : f32 to vector<2x32xf32>
    %140 = arith.addf %139, %138 : vector<2x32xf32>
    %141 = arith.divf %139, %140 : vector<2x32xf32>
    %142 = vector.extract_strided_slice %135 {offsets = [0, 32], sizes = [2, 32], strides = [1, 1]} : vector<2x128xf32> to vector<2x32xf32>
    %143 = arith.negf %142 : vector<2x32xf32>
    %144 = math.exp %143 : vector<2x32xf32>
    %cst_41 = arith.constant 1.000000e+00 : f32
    %145 = vector.broadcast %cst_41 : f32 to vector<2x32xf32>
    %146 = arith.addf %145, %144 : vector<2x32xf32>
    %147 = arith.divf %145, %146 : vector<2x32xf32>
    %148 = vector.extract_strided_slice %135 {offsets = [0, 64], sizes = [2, 32], strides = [1, 1]} : vector<2x128xf32> to vector<2x32xf32>
    %149 = math.tanh %148 : vector<2x32xf32>
    %150 = vector.extract_strided_slice %135 {offsets = [0, 96], sizes = [2, 32], strides = [1, 1]} : vector<2x128xf32> to vector<2x32xf32>
    %151 = arith.negf %150 : vector<2x32xf32>
    %152 = math.exp %151 : vector<2x32xf32>
    %cst_42 = arith.constant 1.000000e+00 : f32
    %153 = vector.broadcast %cst_42 : f32 to vector<2x32xf32>
    %154 = arith.addf %153, %152 : vector<2x32xf32>
    %155 = arith.divf %153, %154 : vector<2x32xf32>
    %156 = arith.mulf %147, %130 : vector<2x32xf32>
    %157 = arith.mulf %141, %149 : vector<2x32xf32>
    %158 = arith.addf %156, %157 : vector<2x32xf32>
    %159 = math.tanh %158 : vector<2x32xf32>
    %160 = arith.mulf %155, %159 : vector<2x32xf32>
    %161 = vector.extract_strided_slice %74 {offsets = [6, 0], sizes = [2, 128], strides = [1, 1]} : vector<8x128xf32> to vector<2x128xf32>
    %cst_43 = arith.constant dense<0.000000e+00> : vector<2x128xf32>
    %162 = tpu.matmul %160, %10, %cst_43 {dimension_numbers = #tpu.dot_dimension_numbers<[1], [0], [0], [1], [0, 0, 1, 1], [], []>} : vector<2x32xf32>, vector<32x128xf32>, vector<2x128xf32> -> vector<2x128xf32>
    %163 = arith.addf %161, %162 : vector<2x128xf32>
    %164 = vector.extract_strided_slice %163 {offsets = [0, 0], sizes = [2, 32], strides = [1, 1]} : vector<2x128xf32> to vector<2x32xf32>
    %165 = arith.negf %164 : vector<2x32xf32>
    %166 = math.exp %165 : vector<2x32xf32>
    %cst_44 = arith.constant 1.000000e+00 : f32
    %167 = vector.broadcast %cst_44 : f32 to vector<2x32xf32>
    %168 = arith.addf %167, %166 : vector<2x32xf32>
    %169 = arith.divf %167, %168 : vector<2x32xf32>
    %170 = vector.extract_strided_slice %163 {offsets = [0, 32], sizes = [2, 32], strides = [1, 1]} : vector<2x128xf32> to vector<2x32xf32>
    %171 = arith.negf %170 : vector<2x32xf32>
    %172 = math.exp %171 : vector<2x32xf32>
    %cst_45 = arith.constant 1.000000e+00 : f32
    %173 = vector.broadcast %cst_45 : f32 to vector<2x32xf32>
    %174 = arith.addf %173, %172 : vector<2x32xf32>
    %175 = arith.divf %173, %174 : vector<2x32xf32>
    %176 = vector.extract_strided_slice %163 {offsets = [0, 64], sizes = [2, 32], strides = [1, 1]} : vector<2x128xf32> to vector<2x32xf32>
    %177 = math.tanh %176 : vector<2x32xf32>
    %178 = vector.extract_strided_slice %163 {offsets = [0, 96], sizes = [2, 32], strides = [1, 1]} : vector<2x128xf32> to vector<2x32xf32>
    %179 = arith.negf %178 : vector<2x32xf32>
    %180 = math.exp %179 : vector<2x32xf32>
    %cst_46 = arith.constant 1.000000e+00 : f32
    %181 = vector.broadcast %cst_46 : f32 to vector<2x32xf32>
    %182 = arith.addf %181, %180 : vector<2x32xf32>
    %183 = arith.divf %181, %182 : vector<2x32xf32>
    %184 = arith.mulf %175, %158 : vector<2x32xf32>
    %185 = arith.mulf %169, %177 : vector<2x32xf32>
    %186 = arith.addf %184, %185 : vector<2x32xf32>
    %187 = math.tanh %186 : vector<2x32xf32>
    %188 = arith.mulf %183, %187 : vector<2x32xf32>
    %cst_47 = arith.constant dense<0.000000e+00> : vector<2x32xf32>
    %189 = tpu.matmul %188, %11, %cst_47 {dimension_numbers = #tpu.dot_dimension_numbers<[1], [0], [0], [1], [0, 0, 1, 1], [], []>} : vector<2x32xf32>, vector<32x32xf32>, vector<2x32xf32> -> vector<2x32xf32>
    %190 = vector.broadcast %5 : vector<1x32xf32> to vector<2x32xf32>
    %191 = arith.addf %189, %190 : vector<2x32xf32>
    %cst_48 = arith.constant 0.000000e+00 : f32
    %192 = vector.broadcast %cst_48 : f32 to vector<2x32xf32>
    %193 = arith.maximumf %191, %192 : vector<2x32xf32>
    %cst_49 = arith.constant dense<0.000000e+00> : vector<2x56xf32>
    %194 = tpu.matmul %193, %12, %cst_49 {dimension_numbers = #tpu.dot_dimension_numbers<[1], [0], [0], [1], [0, 0, 1, 1], [], []>} : vector<2x32xf32>, vector<32x56xf32>, vector<2x56xf32> -> vector<2x56xf32>
    %195 = vector.broadcast %6 : vector<1x56xf32> to vector<2x56xf32>
    %196 = arith.addf %194, %195 : vector<2x56xf32>
    %197 = vector.extract_strided_slice %196 {offsets = [0, 0], sizes = [2, 8], strides = [1, 1]} : vector<2x56xf32> to vector<2x8xf32>
    %198 = arith.negf %197 : vector<2x8xf32>
    %199 = math.exp %198 : vector<2x8xf32>
    %cst_50 = arith.constant 1.000000e+00 : f32
    %200 = vector.broadcast %cst_50 : f32 to vector<2x8xf32>
    %201 = arith.addf %200, %199 : vector<2x8xf32>
    %202 = arith.divf %200, %201 : vector<2x8xf32>
    %203 = vector.extract_strided_slice %196 {offsets = [0, 8], sizes = [2, 8], strides = [1, 1]} : vector<2x56xf32> to vector<2x8xf32>
    %204 = math.tanh %203 : vector<2x8xf32>
    %cst_51 = arith.constant 1.000000e+00 : f32
    %205 = vector.broadcast %cst_51 : f32 to vector<2x8xf32>
    %206 = arith.mulf %205, %204 : vector<2x8xf32>
    %207 = vector.extract_strided_slice %196 {offsets = [0, 16], sizes = [2, 8], strides = [1, 1]} : vector<2x56xf32> to vector<2x8xf32>
    %208 = math.tanh %207 : vector<2x8xf32>
    %cst_52 = arith.constant 1.000000e+00 : f32
    %209 = vector.broadcast %cst_52 : f32 to vector<2x8xf32>
    %210 = arith.mulf %209, %208 : vector<2x8xf32>
    %211 = vector.extract_strided_slice %196 {offsets = [0, 24], sizes = [2, 8], strides = [1, 1]} : vector<2x56xf32> to vector<2x8xf32>
    %212 = math.tanh %211 : vector<2x8xf32>
    %cst_53 = arith.constant 1.000000e+00 : f32
    %213 = vector.broadcast %cst_53 : f32 to vector<2x8xf32>
    %214 = arith.mulf %213, %212 : vector<2x8xf32>
    %215 = vector.extract_strided_slice %196 {offsets = [0, 32], sizes = [2, 8], strides = [1, 1]} : vector<2x56xf32> to vector<2x8xf32>
    %216 = math.tanh %215 : vector<2x8xf32>
    %cst_54 = arith.constant 1.000000e+00 : f32
    %217 = vector.broadcast %cst_54 : f32 to vector<2x8xf32>
    %218 = arith.mulf %217, %216 : vector<2x8xf32>
    %219 = vector.extract_strided_slice %196 {offsets = [0, 40], sizes = [2, 8], strides = [1, 1]} : vector<2x56xf32> to vector<2x8xf32>
    %220 = math.tanh %219 : vector<2x8xf32>
    %cst_55 = arith.constant 1.500000e+00 : f32
    %221 = vector.broadcast %cst_55 : f32 to vector<2x8xf32>
    %222 = arith.mulf %221, %220 : vector<2x8xf32>
    %223 = vector.extract_strided_slice %196 {offsets = [0, 48], sizes = [2, 8], strides = [1, 1]} : vector<2x56xf32> to vector<2x8xf32>
    %224 = math.tanh %223 : vector<2x8xf32>
    %cst_56 = arith.constant 1.500000e+00 : f32
    %225 = vector.broadcast %cst_56 : f32 to vector<2x8xf32>
    %226 = arith.mulf %225, %224 : vector<2x8xf32>
    %cst_57 = arith.constant dense<0.000000e+00> : vector<2xf32>
    %227 = vector.multi_reduction <add>, %202, %cst_57 [1] : vector<2x8xf32> to vector<2xf32>
    %228 = vector.shape_cast %227 : vector<2xf32> to vector<2x1xf32>
    %cst_58 = arith.constant 9.99999997E-7 : f32
    %229 = vector.broadcast %cst_58 : f32 to vector<2x1xf32>
    %230 = arith.addf %228, %229 : vector<2x1xf32>
    %231 = vector.broadcast %230 : vector<2x1xf32> to vector<2x8xf32>
    %232 = arith.divf %202, %231 : vector<2x8xf32>
    %233 = arith.mulf %206, %218 : vector<2x8xf32>
    %234 = arith.mulf %210, %214 : vector<2x8xf32>
    %235 = arith.subf %233, %234 : vector<2x8xf32>
    %236 = math.absf %235 : vector<2x8xf32>
    %cst_59 = arith.constant 9.99999997E-7 : f32
    %237 = vector.broadcast %cst_59 : f32 to vector<2x8xf32>
    %238 = arith.addf %236, %237 : vector<2x8xf32>
    %239 = math.sqrt %238 : vector<2x8xf32>
    %240 = arith.mulf %232, %239 : vector<2x8xf32>
    %241 = arith.mulf %232, %206 : vector<2x8xf32>
    %242 = arith.mulf %232, %210 : vector<2x8xf32>
    %243 = arith.mulf %232, %214 : vector<2x8xf32>
    %244 = arith.mulf %232, %218 : vector<2x8xf32>
    %245 = arith.mulf %232, %222 : vector<2x8xf32>
    %246 = arith.mulf %232, %226 : vector<2x8xf32>
    %247 = tpu.concatenate %232, %240, %241, %242, %243, %244, %245, %246 in 1 : vector<2x8xf32>, vector<2x8xf32>, vector<2x8xf32>, vector<2x8xf32>, vector<2x8xf32>, vector<2x8xf32>, vector<2x8xf32>, vector<2x8xf32> -> vector<2x64xf32>
    %c0_60 = arith.constant 0 : index
    %c0_61 = arith.constant 0 : index
    %248 = vector.load %arg2[%c0_60, %c0_61] : memref<64x320xf32, #tpu.memory_space<vmem>>, vector<64x320xf32>
    %cst_62 = arith.constant dense<0.000000e+00> : vector<2x320xf32>
    %249 = tpu.matmul %247, %248, %cst_62 {dimension_numbers = #tpu.dot_dimension_numbers<[1], [0], [0], [1], [0, 0, 1, 1], [], []>} : vector<2x64xf32>, vector<64x320xf32>, vector<2x320xf32> -> vector<2x320xf32>
    %c24_63 = arith.constant 24 : index
    %c0_64 = arith.constant 0 : index
    %250 = vector.load %arg3[%c24_63, %c0_64] : memref<32x384xf32, #tpu.memory_space<vmem>>, vector<2x320xf32>
    tpu.vector_store %arg3[%c24_63, %c0_64], %249 {strides = array<i32>} : memref<32x384xf32, #tpu.memory_space<vmem>>, vector<2x320xf32>,
    %251 = vector.extract_strided_slice %249 {offsets = [0, 0], sizes = [2, 64], strides = [1, 1]} : vector<2x320xf32> to vector<2x64xf32>
    %252 = vector.extract_strided_slice %249 {offsets = [0, 64], sizes = [2, 64], strides = [1, 1]} : vector<2x320xf32> to vector<2x64xf32>
    %253 = vector.extract_strided_slice %249 {offsets = [0, 128], sizes = [2, 64], strides = [1, 1]} : vector<2x320xf32> to vector<2x64xf32>
    %254 = vector.extract_strided_slice %249 {offsets = [0, 192], sizes = [2, 64], strides = [1, 1]} : vector<2x320xf32> to vector<2x64xf32>
    %255 = vector.extract_strided_slice %249 {offsets = [0, 256], sizes = [2, 64], strides = [1, 1]} : vector<2x320xf32> to vector<2x64xf32>
    %256 = arith.mulf %251, %252 : vector<2x64xf32>
    %257 = math.cos %255 : vector<2x64xf32>
    %258 = arith.mulf %256, %257 : vector<2x64xf32>
    %259 = math.sin %255 : vector<2x64xf32>
    %260 = arith.mulf %256, %259 : vector<2x64xf32>
    %261 = arith.mulf %251, %253 : vector<2x64xf32>
    %262 = arith.mulf %251, %254 : vector<2x64xf32>
    %263 = tpu.concatenate %258, %260, %261, %262, %256, %251 in 1 : vector<2x64xf32>, vector<2x64xf32>, vector<2x64xf32>, vector<2x64xf32>, vector<2x64xf32>, vector<2x64xf32> -> vector<2x384xf32>
    %cst_65 = arith.constant dense<0.000000e+00> : vector<2x128xf32>
    %264 = tpu.matmul %263, %15, %cst_65 {dimension_numbers = #tpu.dot_dimension_numbers<[1], [0], [0], [1], [0, 0, 1, 1], [], []>} : vector<2x384xf32>, vector<384x128xf32>, vector<2x128xf32> -> vector<2x128xf32>
    %265 = vector.extract_strided_slice %264 {offsets = [0, 96], sizes = [2, 32], strides = [1, 1]} : vector<2x128xf32> to vector<2x32xf32>
    %cst_66 = arith.constant 9.99999997E-7 : f32
    %266 = vector.broadcast %cst_66 : f32 to vector<2x32xf32>
    %267 = arith.addf %265, %266 : vector<2x32xf32>
    %cst_67 = arith.constant 1.000000e+00 : f32
    %268 = vector.broadcast %cst_67 : f32 to vector<2x32xf32>
    %269 = arith.divf %268, %267 : vector<2x32xf32>
    %270 = vector.extract_strided_slice %264 {offsets = [0, 0], sizes = [2, 32], strides = [1, 1]} : vector<2x128xf32> to vector<2x32xf32>
    %271 = arith.mulf %270, %269 : vector<2x32xf32>
    %272 = vector.extract_strided_slice %264 {offsets = [0, 32], sizes = [2, 32], strides = [1, 1]} : vector<2x128xf32> to vector<2x32xf32>
    %273 = arith.mulf %272, %269 : vector<2x32xf32>
    %274 = vector.extract_strided_slice %264 {offsets = [0, 64], sizes = [2, 32], strides = [1, 1]} : vector<2x128xf32> to vector<2x32xf32>
    %275 = arith.mulf %274, %269 : vector<2x32xf32>
    %276 = tpu.concatenate %271, %273, %275 in 1 : vector<2x32xf32>, vector<2x32xf32>, vector<2x32xf32> -> vector<2x96xf32>
    %c26 = arith.constant 26 : index
    %c0_68 = arith.constant 0 : index
    %277 = vector.load %arg3[%c26, %c0_68] : memref<32x384xf32, #tpu.memory_space<vmem>>, vector<2x96xf32>
    tpu.vector_store %arg3[%c26, %c0_68], %276 {strides = array<i32>} : memref<32x384xf32, #tpu.memory_space<vmem>>, vector<2x96xf32>,
    %cst_69 = arith.constant dense<0.000000e+00> : vector<2x10xf32>
    %278 = tpu.matmul %202, %13, %cst_69 {dimension_numbers = #tpu.dot_dimension_numbers<[1], [0], [0], [1], [0, 0, 1, 1], [], []>} : vector<2x8xf32>, vector<8x10xf32>, vector<2x10xf32> -> vector<2x10xf32>
    %279 = vector.broadcast %7 : vector<1x10xf32> to vector<2x10xf32>
    %280 = arith.addf %278, %279 : vector<2x10xf32>
    %281 = tpu.concatenate %196, %202, %280 in 1 : vector<2x56xf32>, vector<2x8xf32>, vector<2x10xf32> -> vector<2x74xf32>
    %c28 = arith.constant 28 : index
    %c0_70 = arith.constant 0 : index
    %282 = vector.load %arg3[%c28, %c0_70] : memref<32x384xf32, #tpu.memory_space<vmem>>, vector<2x74xf32>
    tpu.vector_store %arg3[%c28, %c0_70], %281 {strides = array<i32>} : memref<32x384xf32, #tpu.memory_space<vmem>>, vector<2x74xf32>,
    return
  }
}

</mosaic_0001>

<bundles_post_ra>
// kernel: mcae_forward.1
= control target key start
LH: loop header
LB: loop body
LE: loop exit
PB: predicated region body
PF: predicated region fallthrough
CT: control target
= control target key end

     0   :  { %8 = vsyncpa [#allocation3], 0  ;;  %s2276_s0 = inlined_call_operand.vmem [shape: f32[8,16], index: 0, kind: input, shape index: {}]   ;;  %s2277_s1 = inlined_call_operand.hbm [shape: f32[752,128], index: 1, kind: input, shape index: {}]   ;;  %s2278_s2 = inlined_call_operand.hbm [shape: f32[64,320], index: 2, kind: input, shape index: {}]   ;;  %s2279_s3 = inlined_call_operand.vmem [shape: f32[32,384], index: 3, kind: output, shape index: {}]  }
   0x1   :  { %s16_s14 = sshll.u32 %s2277_s1, 4  ;;  %s17_s14 = int_to_ptr.hbm [resolvable:$true] %s16_s14 }
   0x2   :  { %9 = vsyncpa [#allocation5], 0  ;;  %s1832_s15 = smov [#allocation2]   ;;  %s29_s19 = sshll.u32 %s2278_s2, 4  ;;  %s30_s19 = int_to_ptr.hbm [resolvable:$true] %s29_s19 }
   0x3   :  { %s18_s16 = sshll.u32 %s1832_s15, 4  ;;  %s1833_s20 = smov 128   ;;  %s19_s16 = int_to_ptr.vmem [resolvable:$true] %s18_s16 }
   0x4   :  { %s1834_s21 = smov 8   ;;  %s1835_s22 = smov [#allocation4]  }
   0x5   :  { %24 = dma.hbm_to_vmem [thread:$0]  %s17_s14, 12032, %s19_s16, [#allocation3], %s1833_s20, %s1833_s20, %s1834_s21  }
   0x6   :  { %s31_s23 = sshll.u32 %s1835_s22, 4  ;;  %s1836_s24 = smov 384   ;;  %s32_s23 = int_to_ptr.vmem [resolvable:$true] %s31_s23 }
   0x7   :  { %s1837_s25 = smov 24  }
   0x8   :  { %37 = dma.hbm_to_vmem [thread:$0]  %s30_s19, 3072, %s32_s23, [#allocation5], %s1836_s24, %s1836_s24, %s1837_s25  }
   0x9   :  { %1828 = dma.done.wait [#allocation3], 12032  }
   0xa   :  { %1829 = vsyncadd [#allocation3], 4294955264 }
   0xb   :  { %1830 = dma.done.wait [#allocation5], 3072  }
   0xc   :  { %1831 = vsyncadd [#allocation5], 4294964224  ;;  %v47_v0 = vld [vmem:[#allocation2 + $0x8] sm:$0xff]  ;;  %v46_v1 = vld [vmem:[#allocation2] sm:$0xff]  ;;  %vm142_vm0 = vcmask 130048   ;;  %vm168_vm1 = vcmask 523264  }
   0xd   :  { %160 = vmatpush.msra.mxu0 %v47_v0  ;;  %v140_v2 = vld [vmem:[%s2276_s0] sm:$0xff]  ;;  %v56_v3 = vld [vmem:[#allocation2 + $0x50] sm:$0xff]  ;;  %v55_v4 = vld [vmem:[#allocation2 + $0x48] sm:$0xff]  ;;  %vm192_vm2 = vcmask 654336   ;;  %vm216_vm4 = vcmask 261120   ;;  %vm218_vm5 = vcmask 392192  }
   0xe   :  { %180 = vmatpush.msra.mxu1 %v56_v3  ;;  %v54_v5 = vld [vmem:[#allocation2 + $0x40] sm:$0xff]  ;;  %v53_v6 = vld [vmem:[#allocation2 + $0x38] sm:$0xff]  ;;  %v52_v7 = vld [vmem:[#allocation2 + $0x30] sm:$0xff]  ;;  %v1838_v58 = vmov 683565275   ;;  %s1846_s29 = smov 64  }
   0xf   :  { %161 = vmatpush.msra.mxu0 %v46_v1  ;;  %v51_v8 = vld [vmem:[#allocation2 + $0x28] sm:$0xff]  ;;  %v50_v9 = vld [vmem:[#allocation2 + $0x20] sm:$0xff]  ;;  %v49_v10 = vld [vmem:[#allocation2 + $0x18] sm:$0xff]  ;;  %v1839_v60 = vmov 2475754826   ;;  %s1847_s30 = smov 32  }
  0x10   :  { %1668 = vmatmul.msk.f32.vlgmr.msra.gmra.mxu0 %vm142_vm0, %v140_v2  ;;  %181 = vmatpush.msra.mxu1 %v55_v4  ;;  %v1891_v11 = vld [vmem:[#allocation2 + $0x10] sm:$0xff]  ;;  %v66_v16 = vld [vmem:[#allocation2 + $0xa0] sm:$0xff]  ;;  %v65_v17 = vld [vmem:[#allocation2 + $0x98] sm:$0xff]  ;;  %v1840_v62 = vmov 2131351028   ;;  %s1848_s4 = smov 104  }
  0x11   :  { %v141_v12 = vperm.slane %v1891_v11, 0  ;;  %637 = vmatpush.msra.mxu3 %v66_v16  ;;  %v64_v18 = vld [vmem:[#allocation2 + $0x90] sm:$0xff]  ;;  %v63_v19 = vld [vmem:[#allocation2 + $0x88] sm:$0xff]  ;;  %v62_v20 = vld [vmem:[#allocation2 + $0x80] sm:$0xff]  ;;  %v167_v25 = vperm.slane %v1891_v11, 1  ;;  %s1849_s5 = smov 120  }
  0x12   :  { %182 = vmatpush.msra.mxu1 %v54_v5  ;;  %v61_v21 = vld [vmem:[#allocation2 + $0x78] sm:$0xff]  ;;  %v60_v22 = vld [vmem:[#allocation2 + $0x70] sm:$0xff]  ;;  %v59_v23 = vld [vmem:[#allocation2 + $0x68] sm:$0xff]  ;;  %v1841_v2 = vmov 2102212464   ;;  %s1850_s6 = smov 96  }
  0x13   :  { %638 = vmatpush.msra.mxu3 %v65_v17  ;;  %v58_v24 = vld [vmem:[#allocation2 + $0x60] sm:$0xff]  ;;  %v57_v26 = vld [vmem:[#allocation2 + $0x58] sm:$0xff]  ;;  %v68_v32 = vld [vmem:[#allocation2 + $0xb0] sm:$0xff]  ;;  %s1851_s7 = smov 112   ;;  %s1852_s8 = smov 88  }
  0x14   :  { %183 = vmatpush.msra.mxu1 %v53_v6  ;;  %v70_v29 = vld [vmem:[#allocation2 + $0xc0] sm:$0xff]  ;;  %v69_v30 = vld [vmem:[#allocation2 + $0xb8] sm:$0xff]  ;;  %v67_v33 = vld [vmem:[#allocation2 + $0xa8] sm:$0xff]  ;;  %v1842_v6 = vmov 920167782   ;;  %s1853_s9 = smov 40  }
  0x15   :  { %639 = vmatpush.msra.mxu3 %v64_v18  ;;  %729 = vmatpush.msrb.mxu0 %v70_v29  ;;  %s1854_s10 = smov 80   ;;  %s1855_s11 = smov 16  }
  0x16   :  { %184 = vmatpush.msra.mxu1 %v52_v7  ;;  %s1856_s12 = smov 48   ;;  %s1857_s13 = smov 56  }
  0x17   :  { %640 = vmatpush.msra.mxu3 %v63_v19  ;;  %730 = vmatpush.msrb.mxu0 %v69_v30 }
  0x18   :  { %185 = vmatpush.msra.mxu1 %v51_v8 }
  0x19   :  { %641 = vmatpush.msra.mxu3 %v62_v20  ;;  %731 = vmatpush.msrb.mxu0 %v68_v32 }
  0x1a   :  { %186 = vmatpush.msra.mxu1 %v50_v9  ;;  %v1843_v9 = vmov 1326507024  }
  0x1b   :  { %642 = vmatpush.msra.mxu3 %v61_v21  ;;  %732 = vmatpush.msrb.mxu0 %v67_v33 }
  0x1c   :  { %187 = vmatpush.msra.mxu1 %v49_v10 }
  0x1d   :  { %643 = vmatpush.msra.mxu3 %v60_v22  ;;  %869 = vmatpush.msra.mxu0 %v70_v29 }
  0x1e   :  { %799 = vmatpush.msrb.mxu1 %v70_v29 }
  0x1f   :  { %644 = vmatpush.msra.mxu3 %v59_v23  ;;  %870 = vmatpush.msra.mxu0 %v69_v30 }
  0x20   :  { %800 = vmatpush.msrb.mxu1 %v69_v30 }
  0x21   :  { %645 = vmatpush.msra.mxu3 %v58_v24  ;;  %871 = vmatpush.msra.mxu0 %v68_v32 }
  0x22   :  { %801 = vmatpush.msrb.mxu1 %v68_v32 }
  0x23   :  { %646 = vmatpush.msra.mxu3 %v57_v26  ;;  %872 = vmatpush.msra.mxu0 %v67_v33 }
  0x24   :  { %802 = vmatpush.msrb.mxu1 %v67_v33 }
  0x25   :  { %666 = vmatpush.msrb.mxu3 %v70_v29 }
  0x27   :  { %667 = vmatpush.msrb.mxu3 %v69_v30 }
  0x29   :  { %668 = vmatpush.msrb.mxu3 %v68_v32 }
  0x2b   :  { %669 = vmatpush.msrb.mxu3 %v67_v33 }
  0x8d   :  { %v163_v13 = vpop.f32.mrf.mxu0 }
  0x8e   :  { %v164_v14 = vadd.f32 %v163_v13, %v141_v12 }
  0x90   :  { %v166_v15 = vmax.f32 %v164_v14, 0.0 }
  0x92   :  { %1669 = vmatmul.msk.f32.vlgmr.msra.gmra.mxu1 %vm168_vm1, %v166_v15 }
 0x10f   :  { %v189_v27 = vpop.f32.mrf.mxu1 }
 0x110   :  { %v190_v28 = vadd.f32 %v189_v27, %v167_v25 }
 0x112   :  { %v1670_v31 = vmul.f32 -1.442695, %v190_v28  ;;  %1727 = vtanh.f32 %v190_v28  ;;  %193 = vst.msk [vmem:[%s2279_s3] sm:$0xff] %vm192_vm2, %v190_v28 }
 0x114   :  { %1729 = vpow2.f32 %v1670_v31 }
 0x118   :  { %v1728_v34 = vpop.eup %1727 }
 0x119   :  { %v1900_v35 = vmul.f32 3.1415927, %v1728_v34  ;;  %v1906_v49 = vmul.f32 1.5, %v1728_v34 }
 0x11a   :  { %v1730_v36 = vpop.eup %1729 }
 0x11b   :  { %v197_v37 = vadd.f32 1.0, %v1730_v36  ;;  %v230_v38 = vand.u32 2139095040, %v1900_v35  ;;  %v227_v41 = vand.u32 2147483647, %v1900_v35 }
 0x11d   :  { %1731 = vrcp.f32 %v197_v37  ;;  %v231_v39 = vshrl.u32 %v230_v38, 23  ;;  %v209_v43 = vand.u32 2147483648, %v197_v37  ;;  %v207_v44 = vand.u32 2147483647, %v197_v37 }
 0x11e   :  { %v234_v46 = vand.u32 8388607, %v227_v41  ;;  %vm203_vm6 = vweird.f32 %v197_v37 }
 0x11f   :  { %v1671_v40 = vadd.s32 4294967169, %v231_v39  ;;  %vm1908_vm7 = vcmp.eq.f32.partialorder %v207_v44, 8.507059e+37  ;;  %v210_v53 = vor.u32 1.1754944e-38, %v209_v43 }
 0x120   :  { %v235_v54 = vor.u32 8388608, %v234_v46 }
 0x121   :  { %v237_v42 = vadd.s32 1, %v1671_v40 }
 0x122   :  { %v1937_v15 = vshll.u32 %v235_v54, 8  ;;  %v1844_v54 = vmov 0  }
 0x123   :  { %v1732_v45 = vpop.eup %1731  ;;  %vm238_vm3 = vcmp.gt.s32.totalorder %v237_v42, 0 }
 0x124   :  { %v199_v47 = vmul.f32 %v1732_v45, %v197_v37  ;;  %v239_v48 = vsel %vm238_vm3, %v237_v42, 0  ;;  %vm204_vm8 = vweird.f32 %v1732_v45  ;;  %v276_v30 = vand.u32 65535, %v1937_v15 }
 0x125   :  { %v241_v50 = vand.u32 31, %v239_v48  ;;  %v1912_v55 = vshrl.u32 %v239_v48, 5  ;;  %vm205_vm9 = vmor %vm203_vm6, %vm204_vm8  ;;  %v277_v32 = vshrl.u32 %v1937_v15, 16 }
 0x126   :  { %v200_v51 = vsub.f32 1.0, %v199_v47 }
 0x127   :  { %v1914_v56 = vsub.s32 32, %v241_v50  ;;  %v244_v59 = vshll.u32 %v1838_v58, %v241_v50  ;;  %v247_v61 = vshll.u32 %v1839_v60, %v241_v50  ;;  %v250_v63 = vshll.u32 %v1840_v62, %v241_v50 }
 0x128   :  { %v201_v57 = vmul.f32 %v1732_v45, %v200_v51  ;;  %v253_v4 = vshll.u32 %v1841_v2, %v241_v50  ;;  %v256_v8 = vshll.u32 %v1842_v6, %v241_v50  ;;  %vm259_vm10 = vcmp.lt.s32.totalorder %v1912_v55, 1 }
 0x129   :  { %v245_v0 = vshrl.u32 %v1839_v60, %v1914_v56  ;;  %v248_v1 = vshrl.u32 %v1840_v62, %v1914_v56  ;;  %v251_v3 = vshrl.u32 %v1841_v2, %v1914_v56  ;;  %v254_v7 = vshrl.u32 %v1842_v6, %v1914_v56 }
 0x12a   :  { %v202_v5 = vadd.f32 %v1732_v45, %v201_v57  ;;  %v257_v10 = vshrl.u32 %v1843_v9, %v1914_v56  ;;  %vm262_vm11 = vcmp.lt.s32.totalorder %v1912_v55, 4  ;;  %vm261_vm12 = vcmp.lt.s32.totalorder %v1912_v55, 3 }
 0x12b   :  { %v1933_v12 = vor.u32 %v245_v0, %v244_v59  ;;  %v1935_v13 = vor.u32 %v248_v1, %v247_v61  ;;  %v252_v14 = vor.u32 %v251_v3, %v250_v63  ;;  %v255_v17 = vor.u32 %v254_v7, %v253_v4 }
 0x12c   :  { %v206_v16 = vsel %vm205_vm9, %v1732_v45, %v202_v5  ;;  %v258_v18 = vor.u32 %v257_v10, %v256_v8  ;;  %vm260_vm13 = vcmp.lt.s32.totalorder %v1912_v55, 2  ;;  %v1845_v59 = vmov 0.0  }
 0x12d   :  { %v1942_v19 = vsel %vm1908_vm7, %v210_v53, %v206_v16  ;;  %v267_v20 = vsel %vm259_vm10, %v1933_v12, %v1935_v13  ;;  %v268_v22 = vsel %vm262_vm11, %v255_v17, 920167782  ;;  %v271_v23 = vsel %vm259_vm10, %v1935_v13, %v252_v14 }
 0x12e   :  { %v217_v21 = vsel %vm216_vm4, %v1942_v19, %v1906_v49  ;;  %v269_v25 = vsel %vm261_vm12, %v252_v14, %v268_v22  ;;  %v272_v26 = vsel %vm262_vm11, %v258_v18, 1326507024  ;;  %v264_v61 = vsel %vm262_vm11, %v252_v14, 2102212464 }
 0x12f   :  { %v219_v24 = vsel %vm218_vm5, %v217_v21, %v1906_v49  ;;  %v270_v28 = vsel %vm260_vm13, %v267_v20, %v269_v25  ;;  %v273_v29 = vsel %vm261_vm12, %v255_v17, %v272_v26  ;;  %v243_v1 = vshrl.u32 %v1838_v58, %v1914_v56 }
 0x130   :  { %v220_v27 = vsel %vm168_vm1, %v219_v24, %v1900_v35  ;;  %v274_v31 = vsel %vm260_vm13, %v271_v23, %v273_v29  ;;  %v300_v33 = vand.u32 65535, %v270_v28  ;;  %v301_v34 = vshrl.u32 %v270_v28, 16 }
 0x131   :  { %221 = vst.msk [vmem:[%s2279_s3 + $0x18] sm:$0xff] %vm192_vm2, %v220_v27  ;;  %1678 = vmatmul.msk.f32.vlgmr.msra.gmra.mxu3 %vm192_vm2, %v220_v27  ;;  %v278_v36 = vand.u32 65535, %v274_v31  ;;  %v279_v37 = vshrl.u32 %v274_v31, 16  ;;  %v263_v10 = vsel %vm259_vm10, %v243_v1, %v1933_v12  ;;  %v265_v14 = vsel %vm261_vm12, %v1935_v13, %v264_v61 }
 0x132   :  { %v303_v38 = vmul.u32 %v301_v34, %v276_v30  ;;  %v304_v39 = vmul.u32 %v300_v33, %v277_v32  ;;  %v302_v43 = vmul.u32 %v300_v33, %v276_v30  ;;  %v305_v47 = vmul.u32 %v301_v34, %v277_v32 }
 0x133   :  { %v281_v40 = vmul.u32 %v279_v37, %v276_v30  ;;  %v282_v42 = vmul.u32 %v278_v36, %v277_v32  ;;  %v280_v45 = vmul.u32 %v278_v36, %v276_v30  ;;  %v283_v48 = vmul.u32 %v279_v37, %v277_v32 }
 0x134   :  { %v306_v44 = vshll.u32 %v303_v38, 16  ;;  %v308_v50 = vshll.u32 %v304_v39, 16  ;;  %v307_v7 = vshrl.u32 %v303_v38, 16  ;;  %v309_v18 = vshrl.u32 %v304_v39, 16 }
 0x135   :  { %v284_v46 = vshll.u32 %v281_v40, 16  ;;  %v286_v52 = vshll.u32 %v282_v42, 16  ;;  %v285_v16 = vshrl.u32 %v281_v40, 16  ;;  %v287_v20 = vshrl.u32 %v282_v42, 16 }
 0x136   :  { %vm310_vm14 = vc.u32 %v302_v43, %v306_v44  ;;  %v312_v51 = vadd.s32 %v306_v44, %v302_v43  ;;  %v266_v22 = vsel %vm260_vm13, %v263_v10, %v265_v14  ;;  %vm229_vm10 = vcmp.lt.s32.totalorder %v1900_v35, 0 }
 0x137   :  { %vm288_vm15 = vc.u32 %v280_v45, %v284_v46  ;;  %v290_v53 = vadd.s32 %v284_v46, %v280_v45  ;;  %v311_v57 = vsel %vm310_vm14, 1, %v1844_v54  ;;  %v320_v27 = vmul.u32 %v1937_v15, %v266_v22 }
 0x138   :  { %v289_v63 = vsel %vm288_vm15, 1, %v1844_v54  ;;  %v313_v0 = vadd.s32 %v311_v57, %v305_v47  ;;  %vm314_vm3 = vc.u32 %v312_v51, %v308_v50  ;;  %v316_v25 = vadd.s32 %v312_v51, %v308_v50 }
 0x139   :  { %670 = vmatmul.f32.vlgmr.msrb.gmra.mxu3 %v1845_v59  ;;  %v291_v3 = vadd.s32 %v289_v63, %v283_v48  ;;  %vm292_vm6 = vc.u32 %v290_v53, %v286_v52  ;;  %v315_v4 = vsel %vm314_vm3, 1, %v1844_v54  ;;  %vm228_vm11 = vcmp.le.f32.partialorder %v227_v41, 0.7853982 }
 0x13a   :  { %v293_v5 = vsel %vm292_vm6, 1, %v1844_v54  ;;  %v317_v8 = vadd.s32 %v315_v4, %v313_v0  ;;  %vm370_vm15 = vweird.f32 %v1900_v35 }
 0x13b   :  { %v295_v17 = vadd.s32 %v293_v5, %v291_v3 }
 0x13c   :  { %v318_v56 = vadd.s32 %v317_v8, %v307_v7 }
 0x13d   :  { %v296_v21 = vadd.s32 %v295_v17, %v285_v16 }
 0x13e   :  { %v319_v23 = vadd.s32 %v318_v56, %v309_v18 }
 0x13f   :  { %v297_v24 = vadd.s32 %v296_v21, %v287_v20 }
 0x140   :  { %v323_v26 = vadd.s32 1, %v319_v23 }
 0x141   :  { %vm322_vm7 = vc.u32 %v297_v24, %v316_v25  ;;  %v321_v37 = vadd.s32 %v316_v25, %v297_v24 }
 0x142   :  { %v324_v12 = vsel %vm322_vm7, %v323_v26, %v319_v23  ;;  %v627_v26 = vperm.slane %v1891_v11, 2 }
 0x143   :  { %v325_v28 = vadd.s32 %v324_v12, %v320_v27 }
 0x145   :  { %v326_v29 = vadd.s32 536870912, %v325_v28 }
 0x147   :  { %v327_v13 = vshrl.u32 %v326_v29, 30 }
 0x149   :  { %v328_v30 = vshll.u32 %v327_v13, 30  ;;  %v351_v57 = vsub.s32 4, %v327_v13 }
 0x14b   :  { %v329_v31 = vsub.s32 %v325_v28, %v328_v30  ;;  %v352_v1 = vsel %vm229_vm10, %v351_v57, %v327_v13 }
 0x14c   :  { %v2001_v5 = vsel %vm228_vm11, 0, %v352_v1 }
 0x14d   :  { %vm330_vm8 = vcmp.lt.s32.totalorder %v329_v31, 0  ;;  %v331_v32 = vsub.s32 0, %v329_v31  ;;  %v371_v41 = vand.u32 3, %v2001_v5 }
 0x14f   :  { %v332_v33 = vsel %vm330_vm8, %v331_v32, %v329_v31  ;;  %vm376_vm12 = vcmp.eq.s32.totalorder %v371_v41, 2  ;;  %vm373_vm13 = vcmp.eq.s32.totalorder %v371_v41, 0  ;;  %vm372_vm14 = vcmp.lt.s32.totalorder %v371_v41, 2 }
 0x150   :  { %v333_v34 = vclz %v332_v33 }
 0x152   :  { %v1672_v36 = vadd.s32 4294967294, %v333_v34 }
 0x154   :  { %vm1673_vm9 = vcmp.lt.s32.totalorder %v1672_v36, 0 }
 0x155   :  { %v336_v55 = vsel %vm1673_vm9, 0, %v1672_v36 }
 0x156   :  { %v337_v38 = vsub.s32 32, %v336_v55  ;;  %v341_v39 = vsub.s32 4294967266, %v336_v55  ;;  %v338_v40 = vshll.u32 %v329_v31, %v336_v55 }
 0x158   :  { %v339_v42 = vshrl.u32 %v321_v37, %v337_v38  ;;  %v342_v15 = vadd.s32 127, %v341_v39 }
 0x15a   :  { %v340_v43 = vor.u32 %v339_v42, %v338_v40  ;;  %v343_v44 = vshll.u32 %v342_v15, 23 }
 0x15c   :  { %v344_v45 = vor.u32 4788187, %v343_v44  ;;  %v347_v47 = vcvt.s32.f32 %v340_v43 }
 0x15e   :  { %v345_v46 = vand.u32 2147483647, %v344_v45 }
 0x160   :  { %v348_v48 = vmul.f32 %v347_v47, %v345_v46 }
 0x162   :  { %v349_v50 = vxor.u32 2147483648, %v348_v48 }
 0x164   :  { %v350_v51 = vsel %vm229_vm10, %v349_v50, %v348_v48 }
 0x165   :  { %v353_v52 = vsel %vm228_vm11, %v1900_v35, %v350_v51  ;;  %v1126_v35 = vld [vmem:[#allocation4 + $0xb0] sm:$0xff] }
 0x166   :  { %v355_v53 = vmul.f32 %v353_v52, %v353_v52 }
 0x168   :  { %v356_v59 = vmul.f32 -0.001358992, %v355_v53  ;;  %v363_v61 = vmul.f32 -0.00019511016, %v355_v53 }
 0x16a   :  { %v357_v63 = vadd.f32 0.041655596, %v356_v59  ;;  %v364_v0 = vadd.f32 0.008332121, %v363_v61 }
 0x16c   :  { %v358_v3 = vmul.f32 %v357_v63, %v355_v53  ;;  %v365_v4 = vmul.f32 %v364_v0, %v355_v53 }
 0x16e   :  { %v359_v7 = vadd.f32 -0.4999988, %v358_v3  ;;  %v366_v8 = vadd.f32 -0.16666654, %v365_v4 }
 0x170   :  { %v360_v10 = vmul.f32 %v359_v7, %v355_v53  ;;  %v367_v14 = vmul.f32 %v366_v8, %v355_v53 }
 0x172   :  { %v2004_v16 = vadd.f32 1.0, %v360_v10  ;;  %v368_v17 = vadd.f32 1.0, %v367_v14 }
 0x174   :  { %v2006_v18 = vmul.f32 %v368_v17, %v353_v52  ;;  %v377_v56 = vxor.u32 2147483648, %v2004_v16 }
 0x176   :  { %v374_v20 = vxor.u32 2147483648, %v2006_v18  ;;  %v378_v21 = vsel %vm376_vm12, %v377_v56, %v2006_v18 }
 0x178   :  { %v375_v22 = vsel %vm373_vm13, %v2004_v16, %v374_v20 }
 0x179   :  { %v379_v23 = vsel %vm372_vm14, %v375_v22, %v378_v21 }
 0x17a   :  { %v2019_v24 = vsel %vm370_vm15, nan, %v379_v23 }
 0x1b4   :  { %v648_v25 = vpop.f32.mrf.mxu3 }
 0x1b5   :  { %v2022_v27 = vadd.f32 %v648_v25, %v627_v26 }
 0x1bc   :  { %v671_v12 = vpop.f32.mrf.mxu3 }
 0x1bd   :  { %v674_v28 = vadd.f32 %v671_v12, %v2022_v27 }
 0x1bf   :  { %1733 = vtanh.f32 %v674_v28  ;;  %v1679_v13 = vmul.f32 -1.442695, %v674_v28 }
 0x1c1   :  { %1735 = vpow2.f32 %v1679_v13 }
 0x1c5   :  { %v1734_v29 = vpop.eup %1733 }
 0x1c6   :  { %697 = vrot.lane.b32.xlu0 %v1734_v29, %s1846_s29 }
 0x1c7   :  { %v1736_v30 = vpop.eup %1735 }
 0x1c8   :  { %v678_v31 = vadd.f32 1.0, %v1736_v30 }
 0x1ca   :  { %1737 = vrcp.f32 %v678_v31  ;;  %v690_v37 = vand.u32 2147483648, %v678_v31  ;;  %vm684_vm6 = vweird.f32 %v678_v31  ;;  %v688_v38 = vand.u32 2147483647, %v678_v31 }
 0x1cc   :  { %v691_v40 = vor.u32 1.1754944e-38, %v690_v37  ;;  %vm689_vm8 = vcmp.eq.f32.partialorder %v688_v38, 8.507059e+37 }
 0x1d0   :  { %v1738_v32 = vpop.eup %1737 }
 0x1d1   :  { %v680_v33 = vmul.f32 %v1738_v32, %v678_v31  ;;  %vm685_vm3 = vweird.f32 %v1738_v32 }
 0x1d2   :  { %vm686_vm7 = vmor %vm684_vm6, %vm685_vm3 }
 0x1d3   :  { %v681_v34 = vsub.f32 1.0, %v680_v33 }
 0x1d5   :  { %v682_v36 = vmul.f32 %v1738_v32, %v681_v34 }
 0x1d7   :  { %v683_v55 = vadd.f32 %v1738_v32, %v682_v36 }
 0x1d9   :  { %v687_v39 = vsel %vm686_vm7, %v1738_v32, %v683_v55 }
 0x1da   :  { %v692_v15 = vsel %vm689_vm8, %v691_v40, %v687_v39 }
 0x1db   :  { %v695_v44 = vmul.f32 0.0, %v692_v15 }
 0x238   :  { %v698_v42 = vpop.permute.xlu0 %697 }
 0x239   :  { %v700_v43 = vmul.f32 %v698_v42, %v692_v15 }
 0x23b   :  { %702 = vrot.lane.b32.xlu0 %v700_v43, %s1847_s30 }
 0x2ad   :  { %v703_v45 = vpop.permute.xlu0 %702 }
 0x2ae   :  { %v705_v46 = vadd.f32 %v703_v45, %v695_v44 }
 0x2b0   :  { %1739 = vtanh.f32 %v705_v46  ;;  %v762_v25 = vrot.slane %v705_v46, 6 }
 0x2b6   :  { %v1740_v47 = vpop.eup %1739 }
 0x2b7   :  { %708 = vrot.lane.b32.xlu1 %v1740_v47, %s1846_s29 }
 0x329   :  { %v709_v48 = vpop.permute.xlu1 %708 }
 0x32a   :  { %v711_v50 = vmul.f32 %v709_v48, %v692_v15 }
 0x32c   :  { %713 = vrot.lane.b32.xlu1 %v711_v50, %s1847_s30 }
 0x39e   :  { %v714_v51 = vpop.permute.xlu1 %713 }
 0x39f   :  { %1680 = vmatmul.msk.f32.vlgmr.msrb.gmra.mxu0 %vm216_vm4, %v714_v51 }
 0x3a0   :  { %1159 = vmatpush.msrb.mxu0 %v1126_v35  ;;  %v1110_v35 = vld [vmem:[#allocation4 + $0x30] sm:$0xff] }
 0x41c   :  { %v734_v52 = vpop.f32.mrf.mxu0 }
 0x41d   :  { %v738_v53 = vrot.slane %v734_v52, 6 }
 0x41f   :  { %v740_v57 = vadd.f32 %v738_v53, %v2022_v27 }
 0x421   :  { %1741 = vtanh.f32 %v740_v57  ;;  %v1681_v61 = vmul.f32 -1.442695, %v740_v57 }
 0x423   :  { %1743 = vpow2.f32 %v1681_v61 }
 0x427   :  { %v1742_v59 = vpop.eup %1741 }
 0x428   :  { %766 = vrot.lane.b32.xlu2 %v1742_v59, %s1846_s29 }
 0x429   :  { %v1744_v63 = vpop.eup %1743 }
 0x42a   :  { %v744_v0 = vadd.f32 1.0, %v1744_v63 }
 0x42c   :  { %1745 = vrcp.f32 %v744_v0  ;;  %v756_v10 = vand.u32 2147483648, %v744_v0  ;;  %vm750_vm10 = vweird.f32 %v744_v0  ;;  %v754_v14 = vand.u32 2147483647, %v744_v0 }
 0x42e   :  { %v757_v17 = vor.u32 1.1754944e-38, %v756_v10  ;;  %vm755_vm12 = vcmp.eq.f32.partialorder %v754_v14, 8.507059e+37 }
 0x432   :  { %v1746_v1 = vpop.eup %1745 }
 0x433   :  { %v746_v3 = vmul.f32 %v1746_v1, %v744_v0  ;;  %vm751_vm9 = vweird.f32 %v1746_v1 }
 0x434   :  { %vm752_vm11 = vmor %vm750_vm10, %vm751_vm9 }
 0x435   :  { %v747_v4 = vsub.f32 1.0, %v746_v3 }
 0x437   :  { %v748_v7 = vmul.f32 %v1746_v1, %v747_v4 }
 0x439   :  { %v749_v8 = vadd.f32 %v1746_v1, %v748_v7 }
 0x43b   :  { %v753_v41 = vsel %vm752_vm11, %v1746_v1, %v749_v8 }
 0x43c   :  { %v758_v22 = vsel %vm755_vm12, %v757_v17, %v753_v41 }
 0x43d   :  { %v764_v26 = vmul.f32 %v762_v25, %v758_v22 }
 0x482   :  { %v767_v21 = vpop.permute.xlu2 %766 }
 0x483   :  { %v769_v23 = vmul.f32 %v767_v21, %v758_v22 }
 0x485   :  { %771 = vrot.lane.b32.xlu2 %v769_v23, %s1847_s30 }
 0x4df   :  { %v772_v12 = vpop.permute.xlu2 %771 }
 0x4e0   :  { %v774_v28 = vadd.f32 %v772_v12, %v764_v26 }
 0x4e2   :  { %1747 = vtanh.f32 %v774_v28  ;;  %v832_v53 = vrot.slane %v774_v28, 6 }
 0x4e8   :  { %v1748_v29 = vpop.eup %1747 }
 0x4e9   :  { %777 = vrot.lane.b32.xlu0 %v1748_v29, %s1846_s29 }
 0x55b   :  { %v778_v13 = vpop.permute.xlu0 %777 }
 0x55c   :  { %v780_v30 = vmul.f32 %v778_v13, %v758_v22 }
 0x55e   :  { %v782_v31 = vrot.slane %v780_v30, 2 }
 0x560   :  { %783 = vrot.lane.b32.xlu1 %v782_v31, %s1847_s30 }
 0x5d2   :  { %v784_v32 = vpop.permute.xlu1 %783 }
 0x5d3   :  { %1682 = vmatmul.msk.f32.vlgmr.msrb.gmra.mxu1 %vm216_vm4, %v784_v32 }
 0x650   :  { %v804_v33 = vpop.f32.mrf.mxu1 }
 0x651   :  { %v808_v34 = vrot.slane %v804_v33, 4 }
 0x653   :  { %v810_v36 = vadd.f32 %v808_v34, %v2022_v27 }
 0x655   :  { %1749 = vtanh.f32 %v810_v36  ;;  %v1683_v37 = vmul.f32 -1.442695, %v810_v36 }
 0x657   :  { %1751 = vpow2.f32 %v1683_v37 }
 0x65b   :  { %v1750_v55 = vpop.eup %1749 }
 0x65c   :  { %836 = vrot.lane.b32.xlu2 %v1750_v55, %s1846_s29 }
 0x65d   :  { %v1752_v38 = vpop.eup %1751 }
 0x65e   :  { %v814_v39 = vadd.f32 1.0, %v1752_v38  ;;  %v74_v38 = vld [vmem:[#allocation2 + $0xe0] sm:$0xff] }
 0x65f   :  { %940 = vmatpush.msra.mxu3 %v74_v38 }
 0x660   :  { %1753 = vrcp.f32 %v814_v39  ;;  %v826_v45 = vand.u32 2147483648, %v814_v39  ;;  %vm820_vm14 = vweird.f32 %v814_v39  ;;  %v824_v46 = vand.u32 2147483647, %v814_v39 }
 0x662   :  { %v827_v48 = vor.u32 1.1754944e-38, %v826_v45  ;;  %vm825_vm6 = vcmp.eq.f32.partialorder %v824_v46, 8.507059e+37  ;;  %v78_v45 = vld [vmem:[#allocation2 + $0x100] sm:$0xff]  ;;  %v77_v46 = vld [vmem:[#allocation2 + $0xf8] sm:$0xff] }
 0x663   :  { %965 = vmatpush.msra.mxu1 %v78_v45 }
 0x665   :  { %966 = vmatpush.msra.mxu1 %v77_v46 }
 0x666   :  { %v1754_v40 = vpop.eup %1753 }
 0x667   :  { %v816_v42 = vmul.f32 %v1754_v40, %v814_v39  ;;  %vm821_vm13 = vweird.f32 %v1754_v40  ;;  %v73_v39 = vld [vmem:[#allocation2 + $0xd8] sm:$0xff] }
 0x668   :  { %vm822_vm3 = vmor %vm820_vm14, %vm821_vm13  ;;  %941 = vmatpush.msra.mxu3 %v73_v39 }
 0x669   :  { %v817_v15 = vsub.f32 1.0, %v816_v42  ;;  %v71_v42 = vld [vmem:[#allocation2 + $0xc8] sm:$0xff] }
 0x66b   :  { %v818_v43 = vmul.f32 %v1754_v40, %v817_v15 }
 0x66d   :  { %v819_v44 = vadd.f32 %v1754_v40, %v818_v43 }
 0x66f   :  { %v823_v47 = vsel %vm822_vm3, %v1754_v40, %v819_v44  ;;  %v72_v40 = vld [vmem:[#allocation2 + $0xd0] sm:$0xff]  ;;  %vm994_vm3 = vcmask 58368  }
 0x670   :  { %v828_v51 = vsel %vm825_vm6, %v827_v48, %v823_v47  ;;  %942 = vmatpush.msra.mxu3 %v72_v40  ;;  %v76_v48 = vld [vmem:[#allocation2 + $0xf0] sm:$0xff] }
 0x671   :  { %v834_v57 = vmul.f32 %v832_v53, %v828_v51  ;;  %967 = vmatpush.msra.mxu1 %v76_v48 }
 0x672   :  { %943 = vmatpush.msra.mxu3 %v71_v42 }
 0x6b6   :  { %v837_v50 = vpop.permute.xlu2 %836 }
 0x6b7   :  { %v839_v52 = vmul.f32 %v837_v50, %v828_v51  ;;  %v75_v50 = vld [vmem:[#allocation2 + $0xe8] sm:$0xff] }
 0x6b8   :  { %968 = vmatpush.msra.mxu1 %v75_v50 }
 0x6b9   :  { %841 = vrot.lane.b32.xlu0 %v839_v52, %s1847_s30 }
 0x72b   :  { %v842_v59 = vpop.permute.xlu0 %841 }
 0x72c   :  { %v844_v61 = vadd.f32 %v842_v59, %v834_v57  ;;  %v949_v59 = vperm.slane %v1891_v11, 4 }
 0x72e   :  { %1755 = vtanh.f32 %v844_v61  ;;  %v902_v33 = vrot.slane %v844_v61, 6 }
 0x734   :  { %v1756_v63 = vpop.eup %1755 }
 0x735   :  { %847 = vrot.lane.b32.xlu1 %v1756_v63, %s1846_s29 }
 0x7a7   :  { %v848_v0 = vpop.permute.xlu1 %847 }
 0x7a8   :  { %v850_v1 = vmul.f32 %v848_v0, %v828_v51  ;;  %v921_v51 = vperm.slane %v1891_v11, 3 }
 0x7aa   :  { %v852_v3 = vrot.slane %v850_v1, 4 }
 0x7ac   :  { %853 = vrot.lane.b32.xlu2 %v852_v3, %s1847_s30 }
 0x806   :  { %v854_v4 = vpop.permute.xlu2 %853 }
 0x807   :  { %1684 = vmatmul.msk.f32.vlgmr.msra.gmra.mxu0 %vm216_vm4, %v854_v4 }
 0x884   :  { %v874_v7 = vpop.f32.mrf.mxu0 }
 0x885   :  { %v878_v8 = vrot.slane %v874_v7, 2 }
 0x887   :  { %v880_v10 = vadd.f32 %v878_v8, %v2022_v27 }
 0x889   :  { %1757 = vtanh.f32 %v880_v10  ;;  %v1685_v41 = vmul.f32 -1.442695, %v880_v10 }
 0x88b   :  { %1759 = vpow2.f32 %v1685_v41 }
 0x88f   :  { %v1758_v14 = vpop.eup %1757 }
 0x890   :  { %906 = vrot.lane.b32.xlu0 %v1758_v14, %s1846_s29 }
 0x891   :  { %v1760_v17 = vpop.eup %1759 }
 0x892   :  { %v884_v21 = vadd.f32 1.0, %v1760_v17 }
 0x894   :  { %1761 = vrcp.f32 %v884_v21  ;;  %v896_v28 = vand.u32 2147483648, %v884_v21  ;;  %vm890_vm8 = vweird.f32 %v884_v21  ;;  %v894_v29 = vand.u32 2147483647, %v884_v21 }
 0x896   :  { %v897_v13 = vor.u32 1.1754944e-38, %v896_v28  ;;  %vm895_vm10 = vcmp.eq.f32.partialorder %v894_v29, 8.507059e+37 }
 0x89a   :  { %v1762_v22 = vpop.eup %1761 }
 0x89b   :  { %v886_v23 = vmul.f32 %v1762_v22, %v884_v21  ;;  %vm891_vm7 = vweird.f32 %v1762_v22 }
 0x89c   :  { %vm892_vm9 = vmor %vm890_vm8, %vm891_vm7 }
 0x89d   :  { %v887_v25 = vsub.f32 1.0, %v886_v23 }
 0x89f   :  { %v888_v26 = vmul.f32 %v1762_v22, %v887_v25 }
 0x8a1   :  { %v889_v12 = vadd.f32 %v1762_v22, %v888_v26 }
 0x8a3   :  { %v893_v27 = vsel %vm892_vm9, %v1762_v22, %v889_v12 }
 0x8a4   :  { %v898_v31 = vsel %vm895_vm10, %v897_v13, %v893_v27 }
 0x8a5   :  { %v904_v34 = vmul.f32 %v902_v33, %v898_v31 }
 0x902   :  { %v907_v30 = vpop.permute.xlu0 %906 }
 0x903   :  { %v909_v32 = vmul.f32 %v907_v30, %v898_v31 }
 0x905   :  { %911 = vrot.lane.b32.xlu1 %v909_v32, %s1847_s30 }
 0x977   :  { %v912_v36 = vpop.permute.xlu1 %911 }
 0x978   :  { %v914_v55 = vadd.f32 %v912_v36, %v904_v34 }
 0x97a   :  { %1763 = vtanh.f32 %v914_v55 }
 0x980   :  { %v1764_v37 = vpop.eup %1763 }
 0x981   :  { %917 = vrot.lane.b32.xlu2 %v1764_v37, %s1846_s29 }
 0x9db   :  { %v918_v15 = vpop.permute.xlu2 %917 }
 0x9dc   :  { %v920_v43 = vmul.f32 %v918_v15, %v898_v31 }
 0x9de   :  { %v923_v44 = vrot.slane %v920_v43, 6 }
 0x9e0   :  { %924 = vrot.lane.b32.xlu0 %v923_v44, %s1847_s30 }
 0xa52   :  { %v925_v47 = vpop.permute.xlu0 %924 }
 0xa53   :  { %1686 = vmatmul.msk.f32.vlgmr.msra.gmra.mxu3 %vm216_vm4, %v925_v47 }
 0xad6   :  { %v945_v52 = vpop.f32.mrf.mxu3 }
 0xad7   :  { %v946_v53 = vadd.f32 %v945_v52, %v921_v51 }
 0xad9   :  { %v948_v57 = vmax.f32 %v946_v53, 0.0 }
 0xadb   :  { %1687 = vmatmul.msk.f32.vlgmr.msra.gmra.mxu1 %vm216_vm4, %v948_v57 }
 0xb58   :  { %v970_v61 = vpop.f32.mrf.mxu1 }
 0xb59   :  { %v2051_v63 = vadd.f32 %v970_v61, %v949_v59 }
 0xb5b   :  { %v1688_v0 = vmul.f32 -1.442695, %v2051_v63  ;;  %1765 = vtanh.f32 %v2051_v63 }
 0xb5d   :  { %1767 = vpow2.f32 %v1688_v0 }
 0xb61   :  { %v1766_v1 = vpop.eup %1765 }
 0xb62   :  { %1015 = vrot.lane.b32.xlu2 %v1766_v1, %s1848_s4  ;;  %1019 = vrot.lane.b32.xlu1 %v1766_v1, %s1849_s5  ;;  %v993_v28 = vmul.f32 1.5, %v1766_v1 }
 0xb63   :  { %v1768_v3 = vpop.eup %1767 }
 0xb64   :  { %v976_v4 = vadd.f32 1.0, %v1768_v3 }
 0xb66   :  { %1769 = vrcp.f32 %v976_v4  ;;  %v988_v41 = vand.u32 2147483648, %v976_v4  ;;  %vm982_vm12 = vweird.f32 %v976_v4  ;;  %v986_v17 = vand.u32 2147483647, %v976_v4 }
 0xb68   :  { %v989_v22 = vor.u32 1.1754944e-38, %v988_v41  ;;  %vm987_vm14 = vcmp.eq.f32.partialorder %v986_v17, 8.507059e+37 }
 0xb6a   :  { %1053 = vrot.lane.b32.xlu2 %v1766_v1, %s1850_s6 }
 0xb6c   :  { %v1770_v11 = vpop.eup %1769 }
 0xb6d   :  { %v978_v7 = vmul.f32 %v1770_v11, %v976_v4  ;;  %vm983_vm11 = vweird.f32 %v1770_v11 }
 0xb6e   :  { %vm984_vm13 = vmor %vm982_vm12, %vm983_vm11 }
 0xb6f   :  { %v979_v8 = vsub.f32 1.0, %v978_v7 }
 0xb71   :  { %v980_v10 = vmul.f32 %v1770_v11, %v979_v8  ;;  %v530_v8 = vadd.s32 3, %v2001_v5 }
 0xb73   :  { %v981_v14 = vadd.f32 %v1770_v11, %v980_v10 }
 0xb75   :  { %v985_v21 = vsel %vm984_vm13, %v1770_v11, %v981_v14  ;;  %v531_v14 = vand.u32 3, %v530_v8  ;;  %v88_v8 = vld [vmem:[#allocation2 + $0x150] sm:$0xff] }
 0xb76   :  { %v2057_v23 = vsel %vm987_vm14, %v989_v22, %v985_v21 }
 0xb77   :  { %v995_v25 = vsel %vm994_vm3, %v2057_v23, 0.0  ;;  %vm533_vm12 = vcmp.eq.s32.totalorder %v531_v14, 0  ;;  %vm536_vm13 = vcmp.eq.s32.totalorder %v531_v14, 2  ;;  %vm532_vm14 = vcmp.lt.s32.totalorder %v531_v14, 2  ;;  %v86_v14 = vld [vmem:[#allocation2 + $0x140] sm:$0xff] }
 0xb78   :  { %v535_v17 = vsel %vm533_vm12, %v2004_v16, %v374_v20  ;;  %v538_v21 = vsel %vm536_vm13, %v377_v56, %v2006_v18  ;;  %v1127_v18 = vld [vmem:[#allocation4 + $0xb8] sm:$0xff]  ;;  %vm625_vm3 = vcmask 195584  }
 0xb79   :  { %v539_v22 = vsel %vm532_vm14, %v535_v17, %v538_v21  ;;  %v1123_v56 = vld [vmem:[#allocation4 + $0x98] sm:$0xff]  ;;  %1179 = vmatpush.msrb.mxu3 %v1127_v18  ;;  %v84_v17 = vld [vmem:[#allocation2 + $0x130] sm:$0xff] }
 0xb7a   :  { %v540_v5 = vsel %vm370_vm15, nan, %v539_v22  ;;  %1160 = vmatpush.msrb.mxu0 %v1123_v56  ;;  %vm1094_vm15 = vcmask 64512   ;;  %v83_v21 = vld [vmem:[#allocation2 + $0x128] sm:$0xff]  ;;  %v82_v22 = vld [vmem:[#allocation2 + $0x120] sm:$0xff]  ;;  %v1104_v56 = vld [vmem:[#allocation4] sm:$0xff] }
 0xb7b   :  { %v1107_v18 = vld [vmem:[#allocation4 + $0x18] sm:$0xff] }
 0xb8c   :  { %996 = vadd.xlane.f32.xlu1 %v995_v25 }
 0xba5   :  { %223 = vrot.lane.b32.xlu1 %v1942_v19, %s1851_s7 }
 0xbbc   :  { %v1016_v33 = vpop.permute.xlu2 %1015 }
 0xbbd   :  { %v1018_v55 = vmul.f32 %v1766_v1, %v1016_v33 }
 0xbc4   :  { %v1054_v51 = vpop.permute.xlu2 %1053 }
 0xbd4   :  { %v1020_v26 = vpop.permute.xlu1 %1019 }
 0xbd5   :  { %v1022_v12 = vmul.f32 %v1766_v1, %v1020_v26 }
 0xbd7   :  { %1024 = vrot.lane.b32.xlu0 %v1022_v12, %s1849_s5 }
 0xbdf   :  { %1048 = vrot.lane.b32.xlu0 %v1766_v1, %s1851_s7 }
 0xbe7   :  { %1058 = vrot.lane.b32.xlu0 %v993_v28, %s1852_s8 }
 0xbff   :  { %v997_v29 = vpop.xlane.xlu1 %996 }
 0xc00   :  { %v998_v27 = vadd.f32 1e-06, %v997_v29  ;;  %v1120_v29 = vld [vmem:[#allocation4 + $0x80] sm:$0xff] }
 0xc01   :  { %1161 = vmatpush.msrb.mxu0 %v1120_v29 }
 0xc02   :  { %1771 = vrcp.f32 %v998_v27  ;;  %v1010_v36 = vand.u32 2147483648, %v998_v27  ;;  %vm1004_vm7 = vweird.f32 %v998_v27  ;;  %v1008_v37 = vand.u32 2147483647, %v998_v27 }
 0xc04   :  { %v1011_v42 = vor.u32 1.1754944e-38, %v1010_v36  ;;  %vm1009_vm9 = vcmp.eq.f32.partialorder %v1008_v37, 8.507059e+37  ;;  %v1114_v37 = vld [vmem:[#allocation4 + $0x50] sm:$0xff] }
 0xc08   :  { %v1772_v13 = vpop.eup %1771 }
 0xc09   :  { %v1000_v30 = vmul.f32 %v1772_v13, %v998_v27  ;;  %vm1005_vm6 = vweird.f32 %v1772_v13  ;;  %v1121_v27 = vld [vmem:[#allocation4 + $0x88] sm:$0xff] }
 0xc0a   :  { %vm1006_vm8 = vmor %vm1004_vm7, %vm1005_vm6  ;;  %vm1099_vm6 = vcmask 326656   ;;  %vm1102_vm7 = vcmask 457728  }
 0xc0b   :  { %v1001_v31 = vsub.f32 1.0, %v1000_v30 }
 0xc0d   :  { %v1002_v32 = vmul.f32 %v1772_v13, %v1001_v31 }
 0xc0f   :  { %v1003_v34 = vadd.f32 %v1772_v13, %v1002_v32 }
 0xc11   :  { %v1007_v39 = vsel %vm1006_vm8, %v1772_v13, %v1003_v34  ;;  %vm1193_vm8 = vcmask 517120  }
 0xc12   :  { %v1012_v43 = vsel %vm1009_vm9, %v1011_v42, %v1007_v39  ;;  %v1111_v39 = vld [vmem:[#allocation4 + $0x38] sm:$0xff]  ;;  %v1108_v42 = vld [vmem:[#allocation4 + $0x20] sm:$0xff]  ;;  %vm579_vm9 = vcmask 785408  }
 0xc13   :  { %v2063_v45 = vmul.f32 %v1012_v43, %v2057_v23  ;;  %v1105_v43 = vld [vmem:[#allocation4 + $0x8] sm:$0xff] }
 0xc15   :  { %v1056_v53 = vmul.f32 %v1054_v51, %v2063_v45  ;;  %v1047_v11 = vmul.f32 %v1020_v26, %v2063_v45  ;;  %v1052_v7 = vmul.f32 %v1016_v33, %v2063_v45 }
 0xc17   :  { %v224_v31 = vpop.permute.xlu1 %223 }
 0xc49   :  { %v1025_v38 = vpop.permute.xlu0 %1024 }
 0xc4a   :  { %v1027_v40 = vsub.f32 %v1018_v55, %v1025_v38  ;;  %v1117_v55 = vld [vmem:[#allocation4 + $0x68] sm:$0xff]  ;;  %v1115_v38 = vld [vmem:[#allocation4 + $0x58] sm:$0xff] }
 0xc4b   :  { %1162 = vmatpush.msrb.mxu0 %v1117_v55 }
 0xc4c   :  { %v1028_v15 = vand.u32 2147483647, %v1027_v40  ;;  %v1112_v40 = vld [vmem:[#allocation4 + $0x40] sm:$0xff] }
 0xc4d   :  { %1163 = vmatpush.msrb.mxu0 %v1114_v37 }
 0xc4e   :  { %v1029_v44 = vadd.f32 1e-06, %v1028_v15  ;;  %v1109_v15 = vld [vmem:[#allocation4 + $0x28] sm:$0xff] }
 0xc4f   :  { %1164 = vmatpush.msrb.mxu0 %v1111_v39 }
 0xc50   :  { %1773 = vrsqrt.f32 %v1029_v44  ;;  %vm1037_vm10 = vcmp.eq.f32.partialorder %v1029_v44, inf  ;;  %v1040_v1 = vand.u32 2147483648, %v1029_v44  ;;  %vm1039_vm11 = vcmp.eq.f32.partialorder %v1029_v44, 0.0 }
 0xc51   :  { %v1049_v46 = vpop.permute.xlu0 %1048  ;;  %1165 = vmatpush.msrb.mxu0 %v1108_v42 }
 0xc52   :  { %v1051_v47 = vmul.f32 %v1049_v46, %v2063_v45 }
 0xc53   :  { %1166 = vmatpush.msrb.mxu0 %v1105_v43 }
 0xc54   :  { %1075 = vrot.lane.b32.xlu0 %v1051_v47, %s1837_s25  ;;  %v79_v47 = vld [vmem:[#allocation2 + $0x108] sm:$0xff] }
 0xc56   :  { %v1774_v48 = vpop.eup %1773 }
 0xc57   :  { %v1031_v50 = vmul.f32 %v1774_v48, %v1029_v44 }
 0xc59   :  { %v1032_v52 = vmul.f32 %v1774_v48, %v1031_v50  ;;  %v1059_v10 = vpop.permute.xlu0 %1058 }
 0xc5a   :  { %v1061_v41 = vmul.f32 %v1059_v10, %v2063_v45  ;;  %v87_v10 = vld [vmem:[#allocation2 + $0x148] sm:$0xff] }
 0xc5b   :  { %v1033_v57 = vmul.f32 0.5, %v1032_v52 }
 0xc5c   :  { %1083 = vrot.lane.b32.xlu0 %v1056_v53, %s1853_s9 }
 0xc5d   :  { %v1034_v59 = vsub.f32 1.5, %v1033_v57 }
 0xc5f   :  { %v1035_v61 = vmul.f32 %v1774_v48, %v1034_v59 }
 0xc61   :  { %v1036_v0 = vmul.f32 %v1035_v61, %v1029_v44 }
 0xc63   :  { %v1038_v3 = vsel %vm1037_vm10, %v1029_v44, %v1036_v0  ;;  %v1106_v44 = vld [vmem:[#allocation4 + $0x10] sm:$0xff] }
 0xc64   :  { %v1041_v4 = vsel %vm1039_vm11, %v1040_v1, %v1038_v3  ;;  %v91_v3 = vld [vmem:[#allocation2 + $0x168] sm:$0xff] }
 0xc65   :  { %1043 = vrot.lane.b32.xlu2 %v1041_v4, %s1849_s5  ;;  %v90_v4 = vld [vmem:[#allocation2 + $0x160] sm:$0xff]  ;;  %587 = vmatpush.msra.mxu2 %v91_v3 }
 0xc67   :  { %588 = vmatpush.msra.mxu2 %v90_v4 }
 0xc6d   :  { %1062 = vrot.lane.b32.xlu2 %v993_v28, %s1854_s10  ;;  %v1124_v28 = vld [vmem:[#allocation4 + $0xa0] sm:$0xff] }
 0xc6e   :  { %1180 = vmatpush.msrb.mxu3 %v1124_v28 }
 0xc70   :  { %1181 = vmatpush.msrb.mxu3 %v1121_v27 }
 0xc75   :  { %1071 = vrot.lane.b32.xlu2 %v1047_v11, %s1855_s11 }
 0xc7d   :  { %1079 = vrot.lane.b32.xlu2 %v1052_v7, %s1847_s30  ;;  %v89_v7 = vld [vmem:[#allocation2 + $0x158] sm:$0xff] }
 0xc7e   :  { %589 = vmatpush.msra.mxu2 %v89_v7 }
 0xc80   :  { %590 = vmatpush.msra.mxu2 %v88_v8 }
 0xc82   :  { %591 = vmatpush.msra.mxu2 %v87_v10 }
 0xc84   :  { %592 = vmatpush.msra.mxu2 %v86_v14 }
 0xc85   :  { %1087 = vrot.lane.b32.xlu2 %v1061_v41, %s1856_s12  ;;  %v85_v41 = vld [vmem:[#allocation2 + $0x138] sm:$0xff] }
 0xc86   :  { %593 = vmatpush.msra.mxu2 %v85_v41 }
 0xc88   :  { %594 = vmatpush.msra.mxu2 %v84_v17 }
 0xc8a   :  { %595 = vmatpush.msra.mxu2 %v83_v21 }
 0xc8c   :  { %596 = vmatpush.msra.mxu2 %v82_v22 }
 0xc8d   :  { %542 = vrot.lane.b32.xlu2 %v540_v5, %s1846_s29  ;;  %v81_v5 = vld [vmem:[#allocation2 + $0x118] sm:$0xff] }
 0xc8e   :  { %597 = vmatpush.msra.mxu2 %v81_v5 }
 0xc95   :  { %551 = vrot.lane.b32.xlu2 %v1906_v49, %s1854_s10 }
 0xcbf   :  { %v1044_v25 = vpop.permute.xlu2 %1043 }
 0xcc0   :  { %v1046_v26 = vmul.f32 %v1044_v25, %v2063_v45  ;;  %v80_v25 = vld [vmem:[#allocation2 + $0x110] sm:$0xff] }
 0xcc1   :  { %598 = vmatpush.msra.mxu2 %v80_v25 }
 0xcc2   :  { %1067 = vrot.lane.b32.xlu0 %v1046_v26, %s1834_s21  ;;  %v1125_v26 = vld [vmem:[#allocation4 + $0xa8] sm:$0xff] }
 0xcc3   :  { %1139 = vmatpush.msrb.mxu2 %v1125_v26 }
 0xcc6   :  { %v1076_v46 = vpop.permute.xlu0 %1075 }
 0xcc7   :  { %v1063_v20 = vpop.permute.xlu2 %1062 }
 0xcc8   :  { %v1065_v12 = vmul.f32 %v1063_v20, %v2063_v45  ;;  %v1122_v20 = vld [vmem:[#allocation4 + $0x90] sm:$0xff] }
 0xcc9   :  { %1140 = vmatpush.msrb.mxu2 %v1122_v20 }
 0xcca   :  { %1091 = vrot.lane.b32.xlu0 %v1065_v12, %s1857_s13  ;;  %v1119_v12 = vld [vmem:[#allocation4 + $0x78] sm:$0xff] }
 0xccb   :  { %1141 = vmatpush.msrb.mxu2 %v1119_v12 }
 0xcce   :  { %v1084_v48 = vpop.permute.xlu0 %1083 }
 0xccf   :  { %v1072_v16 = vpop.permute.xlu2 %1071 }
 0xcd2   :  { %547 = vrot.lane.b32.xlu0 %v1906_v49, %s1850_s6  ;;  %v2097_v49 = vmul.f32 %v224_v31, %v1942_v19 }
 0xcd7   :  { %v1080_v13 = vpop.permute.xlu2 %1079 }
 0xcda   :  { %382 = vrot.lane.b32.xlu0 %v2019_v24, %s1846_s29  ;;  %v1118_v24 = vld [vmem:[#allocation4 + $0x70] sm:$0xff] }
 0xcdb   :  { %1182 = vmatpush.msrb.mxu3 %v1118_v24 }
 0xcdd   :  { %1183 = vmatpush.msrb.mxu3 %v1115_v38 }
 0xcdf   :  { %v1088_v30 = vpop.permute.xlu2 %1087  ;;  %1184 = vmatpush.msrb.mxu3 %v1112_v40 }
 0xce1   :  { %1185 = vmatpush.msrb.mxu3 %v1109_v15 }
 0xce3   :  { %1186 = vmatpush.msrb.mxu3 %v1106_v44 }
 0xce5   :  { %1643 = vmatpush.msra.mxu3 %v79_v47 }
 0xce7   :  { %v543_v32 = vpop.permute.xlu2 %542 }
 0xce8   :  { %v545_v33 = vmul.f32 %v543_v32, %v2097_v49 }
 0xcea   :  { %556 = vrot.lane.b32.xlu2 %v545_v33, %s1855_s11 }
 0xcef   :  { %v552_v34 = vpop.permute.xlu2 %551 }
 0xcf0   :  { %v554_v36 = vmul.f32 %v552_v34, %v1942_v19 }
 0xcf2   :  { %564 = vrot.lane.b32.xlu0 %v554_v36, %s1856_s12  ;;  %568 = vrot.lane.b32.xlu2 %v2097_v49, %s1846_s29 }
 0xd34   :  { %v1068_v50 = vpop.permute.xlu0 %1067 }
 0xd35   :  { %v1095_v51 = vsel %vm1094_vm15, %v2063_v45, %v1068_v50 }
 0xd36   :  { %v1096_v52 = vsel %vm142_vm0, %v1095_v51, %v1072_v16  ;;  %v1116_v16 = vld [vmem:[#allocation4 + $0x60] sm:$0xff] }
 0xd37   :  { %v1097_v53 = vsel %vm625_vm3, %v1096_v52, %v1076_v46  ;;  %1142 = vmatpush.msrb.mxu2 %v1116_v16 }
 0xd38   :  { %v1098_v57 = vsel %vm216_vm4, %v1097_v53, %v1080_v13 }
 0xd39   :  { %v1100_v59 = vsel %vm1099_vm6, %v1098_v57, %v1084_v48 }
 0xd3a   :  { %v1101_v61 = vsel %vm218_vm5, %v1100_v59, %v1088_v30 }
 0xd3c   :  { %v1092_v0 = vpop.permute.xlu0 %1091 }
 0xd3d   :  { %v2112_v1 = vsel %vm1102_vm7, %v1101_v61, %v1092_v0 }
 0xd3e   :  { %1690 = vmatmul.msk.f32.vlgmr.msrb.gmra.mxu0 %vm168_vm1, %v2112_v1  ;;  %1691 = vmatmul.msk.f32.vlgmr.msrb.gmra.mxu3 %vm168_vm1, %v2112_v1 }
 0xd44   :  { %v548_v45 = vpop.permute.xlu0 %547  ;;  %v557_v29 = vpop.permute.xlu2 %556 }
 0xd45   :  { %v550_v11 = vmul.f32 %v548_v45, %v1942_v19 }
 0xd46   :  { %1698 = vmatmul.msk.f32.vlgmr.msra.gmra.mxu3 %vm1094_vm15, %v2057_v23 }
 0xd47   :  { %560 = vrot.lane.b32.xlu1 %v550_v11, %s1847_s30 }
 0xd4c   :  { %v383_v28 = vpop.permute.xlu0 %382 }
 0xd4d   :  { %v385_v27 = vmul.f32 %v383_v28, %v2097_v49  ;;  %v569_v49 = vpop.permute.xlu2 %568 }
 0xd4f   :  { %571 = vrot.lane.b32.xlu1 %v1942_v19, %s1854_s10  ;;  %v1113_v19 = vld [vmem:[#allocation4 + $0x48] sm:$0xff]  ;;  %v574_v30 = vsel %vm142_vm0, %v385_v27, %v557_v29 }
 0xd50   :  { %1143 = vmatpush.msrb.mxu2 %v1113_v19 }
 0xd52   :  { %1144 = vmatpush.msrb.mxu2 %v1110_v35 }
 0xd54   :  { %1145 = vmatpush.msrb.mxu2 %v1107_v18 }
 0xd56   :  { %1146 = vmatpush.msrb.mxu2 %v1104_v56 }
 0xd64   :  { %v565_v33 = vpop.permute.xlu0 %564 }
 0xdb9   :  { %v561_v13 = vpop.permute.xlu1 %560 }
 0xdba   :  { %v575_v31 = vsel %vm216_vm4, %v574_v30, %v561_v13 }
 0xdbb   :  { %v2127_v32 = vpop.f32.mrf.mxu0  ;;  %v576_v34 = vsel %vm218_vm5, %v575_v31, %v565_v33 }
 0xdbc   :  { %1192 = vst [vmem:[%s2279_s3 + $0x50] sm:$0x3] %v2127_v32  ;;  %1513 = vrot.lane.b32.xlu0 %v2127_v32, %s1846_s29  ;;  %v577_v24 = vsel %vm168_vm1, %v576_v34, %v569_v49 }
 0xdc1   :  { %v2136_v36 = vpop.f32.mrf.mxu3  ;;  %v572_v55 = vpop.permute.xlu1 %571 }
 0xdc2   :  { %1194 = vst.msk [vmem:[%s2279_s3 + $0x58] sm:$0x3] %vm1193_vm8, %v2136_v36  ;;  %v1203_v37 = vand.u32 2139095040, %v2136_v36  ;;  %v578_v38 = vsel %vm192_vm2, %v577_v24, %v572_v55  ;;  %v1200_v42 = vand.u32 2147483647, %v2136_v36 }
 0xdc3   :  { %1677 = vmatmul.msk.f32.vlgmr.msra.gmra.mxu2 %vm579_vm9, %v578_v38 }
 0xdc4   :  { %v1204_v39 = vshrl.u32 %v1203_v37, 23  ;;  %v1207_v43 = vand.u32 8388607, %v1200_v42 }
 0xdc6   :  { %v1692_v40 = vadd.s32 4294967169, %v1204_v39  ;;  %v1208_v48 = vor.u32 8388608, %v1207_v43 }
 0xdc8   :  { %v1210_v15 = vadd.s32 1, %v1692_v40 }
 0xdca   :  { %vm1211_vm0 = vcmp.gt.s32.totalorder %v1210_v15, 0 }
 0xdcb   :  { %v1212_v44 = vsel %vm1211_vm0, %v1210_v15, 0  ;;  %1689 = vmatmul.msk.f32.vlgmr.msrb.gmra.mxu2 %vm168_vm1, %v2112_v1  ;;  %vm1202_vm0 = vcmp.lt.s32.totalorder %v2136_v36, 0 }
 0xdcc   :  { %v1214_v46 = vand.u32 31, %v1212_v44  ;;  %v2150_v50 = vshrl.u32 %v1212_v44, 5 }
 0xdce   :  { %v1215_v47 = vsub.s32 32, %v1214_v46  ;;  %v1217_v51 = vshll.u32 %v1838_v58, %v1214_v46  ;;  %v1220_v52 = vshll.u32 %v1839_v60, %v1214_v46  ;;  %v1223_v59 = vshll.u32 %v1840_v62, %v1214_v46 }
 0xdcf   :  { %v1226_v0 = vshll.u32 %v1841_v2, %v1214_v46  ;;  %v1229_v45 = vshll.u32 %v1842_v6, %v1214_v46  ;;  %vm1232_vm2 = vcmp.lt.s32.totalorder %v2150_v50, 1  ;;  %vm1235_vm5 = vcmp.lt.s32.totalorder %v2150_v50, 4 }
 0xdd0   :  { %v1218_v53 = vshrl.u32 %v1839_v60, %v1215_v47  ;;  %v1221_v57 = vshrl.u32 %v1840_v62, %v1215_v47  ;;  %v1224_v61 = vshrl.u32 %v1841_v2, %v1215_v47  ;;  %v1227_v1 = vshrl.u32 %v1842_v6, %v1215_v47 }
 0xdd1   :  { %v1230_v3 = vshrl.u32 %v1843_v9, %v1215_v47  ;;  %v2163_v60 = vshll.u32 %v1208_v48, 8  ;;  %vm1234_vm10 = vcmp.lt.s32.totalorder %v2150_v50, 3  ;;  %vm1233_vm11 = vcmp.lt.s32.totalorder %v2150_v50, 2 }
 0xdd2   :  { %v1219_v4 = vor.u32 %v1218_v53, %v1217_v51  ;;  %v1222_v11 = vor.u32 %v1221_v57, %v1220_v52  ;;  %v1225_v7 = vor.u32 %v1224_v61, %v1223_v59  ;;  %v1228_v8 = vor.u32 %v1227_v1, %v1226_v0 }
 0xdd3   :  { %v1231_v10 = vor.u32 %v1230_v3, %v1229_v45  ;;  %v1249_v22 = vand.u32 65535, %v2163_v60  ;;  %v1250_v5 = vshrl.u32 %v2163_v60, 16  ;;  %v1216_v15 = vshrl.u32 %v1838_v58, %v1215_v47 }
 0xdd4   :  { %v1240_v62 = vsel %vm1232_vm2, %v1219_v4, %v1222_v11  ;;  %v1244_v2 = vsel %vm1232_vm2, %v1222_v11, %v1225_v7  ;;  %v1241_v6 = vsel %vm1235_vm5, %v1228_v8, 920167782  ;;  %v1237_v38 = vsel %vm1235_vm5, %v1225_v7, 2102212464 }
 0xdd5   :  { %v1245_v9 = vsel %vm1235_vm5, %v1231_v10, 1326507024  ;;  %v1242_v14 = vsel %vm1234_vm10, %v1225_v7, %v1241_v6  ;;  %v1236_v52 = vsel %vm1232_vm2, %v1216_v15, %v1219_v4  ;;  %v1238_v53 = vsel %vm1234_vm10, %v1222_v11, %v1237_v38 }
 0xdd6   :  { %v1246_v41 = vsel %vm1234_vm10, %v1228_v8, %v1245_v9  ;;  %v1243_v17 = vsel %vm1233_vm11, %v1240_v62, %v1242_v14  ;;  %v1239_v58 = vsel %vm1233_vm11, %v1236_v52, %v1238_v53  ;;  %vm1201_vm2 = vcmp.le.f32.partialorder %v1200_v42, 0.7853982 }
 0xdd7   :  { %v1247_v21 = vsel %vm1233_vm11, %v1244_v2, %v1246_v41  ;;  %v1273_v20 = vand.u32 65535, %v1243_v17  ;;  %v1274_v12 = vshrl.u32 %v1243_v17, 16  ;;  %v1293_v3 = vmul.u32 %v2163_v60, %v1239_v58  ;;  %v135_v58 = vld [vmem:[#allocation2 + $0x2c8] sm:$0xff] }
 0xdd8   :  { %v1251_v25 = vand.u32 65535, %v1247_v21  ;;  %v1252_v26 = vshrl.u32 %v1247_v21, 16 }
 0xdd9   :  { %v1276_v35 = vmul.u32 %v1274_v12, %v1249_v22  ;;  %v1277_v18 = vmul.u32 %v1273_v20, %v1250_v5  ;;  %v1275_v27 = vmul.u32 %v1273_v20, %v1249_v22  ;;  %v1278_v33 = vmul.u32 %v1274_v12, %v1250_v5 }
 0xdda   :  { %v1254_v16 = vmul.u32 %v1252_v26, %v1249_v22  ;;  %v1255_v19 = vmul.u32 %v1251_v25, %v1250_v5  ;;  %v1253_v56 = vmul.u32 %v1251_v25, %v1249_v22  ;;  %v1256_v29 = vmul.u32 %v1252_v26, %v1250_v5 }
 0xddb   :  { %v1279_v13 = vshll.u32 %v1276_v35, 16  ;;  %v1281_v49 = vshll.u32 %v1277_v18, 16  ;;  %v1280_v48 = vshrl.u32 %v1276_v35, 16  ;;  %v1282_v61 = vshrl.u32 %v1277_v18, 16 }
 0xddc   :  { %v1257_v28 = vshll.u32 %v1254_v16, 16  ;;  %v1259_v30 = vshll.u32 %v1255_v19, 16  ;;  %v1258_v43 = vshrl.u32 %v1254_v16, 16  ;;  %v1260_v57 = vshrl.u32 %v1255_v19, 16 }
 0xddd   :  { %vm1283_vm13 = vc.u32 %v1275_v27, %v1279_v13  ;;  %v1285_v55 = vadd.s32 %v1279_v13, %v1275_v27 }
 0xdde   :  { %vm1261_vm12 = vc.u32 %v1253_v56, %v1257_v28  ;;  %v1263_v31 = vadd.s32 %v1257_v28, %v1253_v56  ;;  %v1284_v37 = vsel %vm1283_vm13, 1, %v1844_v54 }
 0xddf   :  { %v1262_v34 = vsel %vm1261_vm12, 1, %v1844_v54  ;;  %v1286_v40 = vadd.s32 %v1284_v37, %v1278_v33  ;;  %vm1287_vm15 = vc.u32 %v1285_v55, %v1281_v49  ;;  %v1289_v45 = vadd.s32 %v1285_v55, %v1281_v49 }
 0xde0   :  { %v1264_v24 = vadd.s32 %v1262_v34, %v1256_v29  ;;  %vm1265_vm14 = vc.u32 %v1263_v31, %v1259_v30  ;;  %v1288_v46 = vsel %vm1287_vm15, 1, %v1844_v54  ;;  %vm1343_vm12 = vweird.f32 %v2136_v36 }
 0xde1   :  { %v1266_v39 = vsel %vm1265_vm14, 1, %v1844_v54  ;;  %v1290_v51 = vadd.s32 %v1288_v46, %v1286_v40 }
 0xde2   :  { %v1268_v44 = vadd.s32 %v1266_v39, %v1264_v24 }
 0xde3   :  { %v1291_v0 = vadd.s32 %v1290_v51, %v1280_v48 }
 0xde4   :  { %v1269_v59 = vadd.s32 %v1268_v44, %v1258_v43 }
 0xde5   :  { %v1292_v47 = vadd.s32 %v1291_v0, %v1282_v61  ;;  %v137_v61 = vld [vmem:[#allocation2 + $0x2d8] sm:$0xff]  ;;  %v136_v0 = vld [vmem:[#allocation2 + $0x2d0] sm:$0xff] }
 0xde6   :  { %v1270_v1 = vadd.s32 %v1269_v59, %v1260_v57  ;;  %v139_v57 = vld [vmem:[#allocation2 + $0x2e8] sm:$0xff]  ;;  %v138_v59 = vld [vmem:[#allocation2 + $0x2e0] sm:$0xff] }
 0xde7   :  { %v1296_v54 = vadd.s32 1, %v1292_v47  ;;  %1568 = vmatpush.msra.mxu0 %v139_v57  ;;  %v93_v57 = vld [vmem:[#allocation2 + $0x178] sm:$0xff] }
 0xde8   :  { %vm1295_vm6 = vc.u32 %v1270_v1, %v1289_v45  ;;  %v1294_v50 = vadd.s32 %v1289_v45, %v1270_v1  ;;  %v123_v1 = vld [vmem:[#allocation2 + $0x268] sm:$0xff]  ;;  %v122_v45 = vld [vmem:[#allocation2 + $0x260] sm:$0xff] }
 0xde9   :  { %v1297_v7 = vsel %vm1295_vm6, %v1296_v54, %v1292_v47  ;;  %1569 = vmatpush.msra.mxu0 %v138_v59  ;;  %1548 = vmatpush.msra.mxu2 %v123_v1  ;;  %v134_v47 = vld [vmem:[#allocation2 + $0x2c0] sm:$0xff]  ;;  %v133_v54 = vld [vmem:[#allocation2 + $0x2b8] sm:$0xff]  ;;  %v92_v1 = vld [vmem:[#allocation2 + $0x170] sm:$0xff] }
 0xdea   :  { %v1298_v8 = vadd.s32 %v1297_v7, %v1293_v3  ;;  %v132_v3 = vld [vmem:[#allocation2 + $0x2b0] sm:$0xff]  ;;  %v131_v7 = vld [vmem:[#allocation2 + $0x2a8] sm:$0xff] }
 0xdeb   :  { %1570 = vmatpush.msra.mxu0 %v137_v61  ;;  %1549 = vmatpush.msra.mxu2 %v122_v45 }
 0xdec   :  { %v1299_v4 = vadd.s32 536870912, %v1298_v8 }
 0xded   :  { %1571 = vmatpush.msra.mxu0 %v136_v0 }
 0xdee   :  { %v1300_v10 = vshrl.u32 %v1299_v4, 30  ;;  %v129_v4 = vld [vmem:[#allocation2 + $0x298] sm:$0xff] }
 0xdef   :  { %1572 = vmatpush.msra.mxu0 %v135_v58 }
 0xdf0   :  { %v1301_v62 = vshll.u32 %v1300_v10, 30  ;;  %v1324_v29 = vsub.s32 4, %v1300_v10 }
 0xdf1   :  { %1573 = vmatpush.msra.mxu0 %v134_v47  ;;  %v1858_v47 = vmov 24  }
 0xdf2   :  { %v1302_v11 = vsub.s32 %v1298_v8, %v1301_v62  ;;  %v1325_v33 = vsel %vm1202_vm0, %v1324_v29, %v1300_v10  ;;  %v130_v8 = vld [vmem:[#allocation2 + $0x2a0] sm:$0xff]  ;;  %v128_v10 = vld [vmem:[#allocation2 + $0x290] sm:$0xff]  ;;  %1726 = vset.pattern.permute.xlu0 %v1858_v47 }
 0xdf3   :  { %v2204_v55 = vsel %vm1201_vm2, 0, %v1325_v33  ;;  %1574 = vmatpush.msra.mxu0 %v133_v54  ;;  %v108_v29 = vld [vmem:[#allocation2 + $0x1f0] sm:$0xff]  ;;  %v105_v33 = vld [vmem:[#allocation2 + $0x1d8] sm:$0xff] }
 0xdf4   :  { %vm1303_vm8 = vcmp.lt.s32.totalorder %v1302_v11, 0  ;;  %v1304_v2 = vsub.s32 0, %v1302_v11  ;;  %v1344_v42 = vand.u32 3, %v2204_v55 }
 0xdf5   :  { %1575 = vmatpush.msra.mxu0 %v132_v3 }
 0xdf6   :  { %v1305_v6 = vsel %vm1303_vm8, %v1304_v2, %v1302_v11  ;;  %vm1349_vm5 = vcmp.eq.s32.totalorder %v1344_v42, 2  ;;  %vm1346_vm10 = vcmp.eq.s32.totalorder %v1344_v42, 0  ;;  %vm1345_vm11 = vcmp.lt.s32.totalorder %v1344_v42, 2  ;;  %v126_v2 = vld [vmem:[#allocation2 + $0x280] sm:$0xff] }
 0xdf7   :  { %v1306_v9 = vclz %v1305_v6  ;;  %1576 = vmatpush.msra.mxu0 %v131_v7 }
 0xdf9   :  { %v1693_v14 = vadd.s32 4294967294, %v1306_v9  ;;  %1577 = vmatpush.msra.mxu0 %v130_v8 }
 0xdfb   :  { %vm1694_vm9 = vcmp.lt.s32.totalorder %v1693_v14, 0  ;;  %1578 = vmatpush.msra.mxu0 %v129_v4 }
 0xdfc   :  { %v1309_v41 = vsel %vm1694_vm9, 0, %v1693_v14 }
 0xdfd   :  { %v1310_v17 = vsub.s32 32, %v1309_v41  ;;  %v1314_v21 = vsub.s32 4294967266, %v1309_v41  ;;  %v1311_v22 = vshll.u32 %v1302_v11, %v1309_v41  ;;  %v127_v11 = vld [vmem:[#allocation2 + $0x288] sm:$0xff]  ;;  %1579 = vmatpush.msra.mxu0 %v128_v10  ;;  %v121_v41 = vld [vmem:[#allocation2 + $0x258] sm:$0xff] }
 0xdfe   :  { %1550 = vmatpush.msra.mxu2 %v121_v41 }
 0xdff   :  { %v1312_v5 = vshrl.u32 %v1294_v50, %v1310_v17  ;;  %v1315_v25 = vadd.s32 127, %v1314_v21  ;;  %1580 = vmatpush.msra.mxu0 %v127_v11  ;;  %v125_v50 = vld [vmem:[#allocation2 + $0x278] sm:$0xff]  ;;  %v120_v17 = vld [vmem:[#allocation2 + $0x250] sm:$0xff] }
 0xe00   :  { %v124_v21 = vld [vmem:[#allocation2 + $0x270] sm:$0xff]  ;;  %1551 = vmatpush.msra.mxu2 %v120_v17 }
 0xe01   :  { %v1313_v60 = vor.u32 %v1312_v5, %v1311_v22  ;;  %v1316_v26 = vshll.u32 %v1315_v25, 23  ;;  %1581 = vmatpush.msra.mxu0 %v126_v2  ;;  %v119_v22 = vld [vmem:[#allocation2 + $0x248] sm:$0xff]  ;;  %v118_v5 = vld [vmem:[#allocation2 + $0x240] sm:$0xff]  ;;  %v117_v25 = vld [vmem:[#allocation2 + $0x238] sm:$0xff] }
 0xe02   :  { %1552 = vmatpush.msra.mxu2 %v119_v22 }
 0xe03   :  { %v1317_v20 = vor.u32 4788187, %v1316_v26  ;;  %v1320_v16 = vcvt.s32.f32 %v1313_v60  ;;  %1582 = vmatpush.msra.mxu0 %v125_v50  ;;  %v116_v60 = vld [vmem:[#allocation2 + $0x230] sm:$0xff]  ;;  %v115_v26 = vld [vmem:[#allocation2 + $0x228] sm:$0xff] }
 0xe04   :  { %1553 = vmatpush.msra.mxu2 %v118_v5 }
 0xe05   :  { %v1318_v12 = vand.u32 2147483647, %v1317_v20  ;;  %1583 = vmatpush.msra.mxu0 %v124_v21  ;;  %v114_v20 = vld [vmem:[#allocation2 + $0x220] sm:$0xff] }
 0xe06   :  { %1554 = vmatpush.msra.mxu2 %v117_v25 }
 0xe07   :  { %v1321_v19 = vmul.f32 %v1320_v16, %v1318_v12  ;;  %v113_v12 = vld [vmem:[#allocation2 + $0x218] sm:$0xff]  ;;  %v1499_v16 = vadd.s32 3, %v2204_v55  ;;  %v104_v55 = vld [vmem:[#allocation2 + $0x1d0] sm:$0xff] }
 0xe08   :  { %1555 = vmatpush.msra.mxu2 %v116_v60 }
 0xe09   :  { %v1322_v35 = vxor.u32 2147483648, %v1321_v19 }
 0xe0a   :  { %1556 = vmatpush.msra.mxu2 %v115_v26 }
 0xe0b   :  { %v1323_v18 = vsel %vm1202_vm0, %v1322_v35, %v1321_v19  ;;  %v112_v19 = vld [vmem:[#allocation2 + $0x210] sm:$0xff]  ;;  %v111_v35 = vld [vmem:[#allocation2 + $0x208] sm:$0xff] }
 0xe0c   :  { %v1326_v56 = vsel %vm1201_vm2, %v2136_v36, %v1323_v18  ;;  %1557 = vmatpush.msra.mxu2 %v114_v20  ;;  %v1500_v18 = vand.u32 3, %v1499_v16  ;;  %v98_v36 = vld [vmem:[#allocation2 + $0x1a0] sm:$0xff]  ;;  %v1779_v16 = vld [vmem:[#allocation2 + $0x10] sm:$0xff] }
 0xe0d   :  { %v1328_v28 = vmul.f32 %v1326_v56, %v1326_v56 }
 0xe0e   :  { %1558 = vmatpush.msra.mxu2 %v113_v12  ;;  %vm1502_vm13 = vcmp.eq.s32.totalorder %v1500_v18, 0  ;;  %vm1505_vm14 = vcmp.eq.s32.totalorder %v1500_v18, 2  ;;  %vm1501_vm15 = vcmp.lt.s32.totalorder %v1500_v18, 2  ;;  %v1645_v18 = vpop.f32.mrf.mxu3 }
 0xe0f   :  { %v1329_v27 = vmul.f32 -0.001358992, %v1328_v28  ;;  %v1336_v13 = vmul.f32 -0.00019511016, %v1328_v28 }
 0xe10   :  { %1559 = vmatpush.msra.mxu2 %v112_v19  ;;  %v1624_v19 = vperm.slane %v1779_v16, 5 }
 0xe11   :  { %v1330_v30 = vadd.f32 0.041655596, %v1329_v27  ;;  %v1337_v31 = vadd.f32 0.008332121, %v1336_v13  ;;  %v107_v13 = vld [vmem:[#allocation2 + $0x1e8] sm:$0xff] }
 0xe12   :  { %1560 = vmatpush.msra.mxu2 %v111_v35  ;;  %1528 = vmatpush.msrb.mxu1 %v107_v13 }
 0xe13   :  { %v1331_v34 = vmul.f32 %v1330_v30, %v1328_v28  ;;  %v1338_v49 = vmul.f32 %v1337_v31, %v1328_v28  ;;  %v106_v30 = vld [vmem:[#allocation2 + $0x1e0] sm:$0xff] }
 0xe14   :  { %1529 = vmatpush.msrb.mxu1 %v106_v30 }
 0xe15   :  { %v1332_v24 = vadd.f32 -0.4999988, %v1331_v34  ;;  %v1339_v37 = vadd.f32 -0.16666654, %v1338_v49 }
 0xe16   :  { %1530 = vmatpush.msrb.mxu1 %v105_v33 }
 0xe17   :  { %v1333_v38 = vmul.f32 %v1332_v24, %v1328_v28  ;;  %v1340_v39 = vmul.f32 %v1339_v37, %v1328_v28  ;;  %v109_v28 = vld [vmem:[#allocation2 + $0x1f8] sm:$0xff] }
 0xe18   :  { %1531 = vmatpush.msrb.mxu1 %v104_v55 }
 0xe19   :  { %v2207_v40 = vadd.f32 1.0, %v1333_v38  ;;  %v1341_v15 = vadd.f32 1.0, %v1340_v39  ;;  %v103_v38 = vld [vmem:[#allocation2 + $0x1c8] sm:$0xff] }
 0xe1a   :  { %1532 = vmatpush.msrb.mxu1 %v103_v38 }
 0xe1b   :  { %v2209_v43 = vmul.f32 %v1341_v15, %v1326_v56  ;;  %v1350_v44 = vxor.u32 2147483648, %v2207_v40  ;;  %v110_v56 = vld [vmem:[#allocation2 + $0x200] sm:$0xff] }
 0xe1c   :  { %1561 = vmatpush.msra.mxu2 %v110_v56  ;;  %v102_v15 = vld [vmem:[#allocation2 + $0x1c0] sm:$0xff] }
 0xe1d   :  { %v1347_v46 = vxor.u32 2147483648, %v2209_v43  ;;  %v1351_v48 = vsel %vm1349_vm5, %v1350_v44, %v2209_v43  ;;  %v1507_v31 = vsel %vm1505_vm14, %v1350_v44, %v2209_v43  ;;  %v101_v43 = vld [vmem:[#allocation2 + $0x1b8] sm:$0xff]  ;;  %1533 = vmatpush.msrb.mxu1 %v102_v15  ;;  %v100_v44 = vld [vmem:[#allocation2 + $0x1b0] sm:$0xff] }
 0xe1e   :  { %1562 = vmatpush.msra.mxu2 %v109_v28 }
 0xe1f   :  { %v1348_v51 = vsel %vm1346_vm10, %v2207_v40, %v1347_v46  ;;  %v1504_v27 = vsel %vm1502_vm13, %v2207_v40, %v1347_v46  ;;  %1534 = vmatpush.msrb.mxu1 %v101_v43  ;;  %v99_v46 = vld [vmem:[#allocation2 + $0x1a8] sm:$0xff]  ;;  %vm1660_vm13 = vcmask 603140  }
 0xe20   :  { %v1352_v52 = vsel %vm1345_vm11, %v1348_v51, %v1351_v48  ;;  %1563 = vmatpush.msra.mxu2 %v108_v29  ;;  %v1508_v34 = vsel %vm1501_vm15, %v1504_v27, %v1507_v31  ;;  %v97_v48 = vld [vmem:[#allocation2 + $0x198] sm:$0xff]  ;;  %v96_v51 = vld [vmem:[#allocation2 + $0x190] sm:$0xff]  ;;  %v1646_v29 = vadd.f32 %v1645_v18, %v1624_v19 }
 0xe21   :  { %v2222_v53 = vsel %vm1343_vm12, nan, %v1352_v52  ;;  %v1509_v37 = vsel %vm1343_vm12, nan, %v1508_v34  ;;  %1535 = vmatpush.msrb.mxu1 %v100_v44  ;;  %v95_v52 = vld [vmem:[#allocation2 + $0x188] sm:$0xff]  ;;  %vm1622_vm12 = vcmask 781314  }
 0xe23   :  { %1536 = vmatpush.msrb.mxu1 %v99_v46 }
 0xe25   :  { %1537 = vmatpush.msrb.mxu1 %v98_v36 }
 0xe27   :  { %1538 = vmatpush.msrb.mxu1 %v97_v48 }
 0xe29   :  { %1539 = vmatpush.msrb.mxu1 %v96_v51 }
 0xe2b   :  { %1540 = vmatpush.msrb.mxu1 %v95_v52 }
 0xe2e   :  { %v1514_v6 = vpop.permute.xlu0 %1513 }
 0xe46   :  { %v2224_v62 = vpop.f32.mrf.mxu2 }
 0xe47   :  { %v603_v54 = vadd.f32 1e-06, %v2224_v62 }
 0xe49   :  { %1775 = vrcp.f32 %v603_v54  ;;  %v615_v12 = vand.u32 2147483648, %v603_v54  ;;  %vm609_vm5 = vweird.f32 %v603_v54  ;;  %v613_v35 = vand.u32 2147483647, %v603_v54 }
 0xe4b   :  { %v616_v28 = vor.u32 1.1754944e-38, %v615_v12  ;;  %vm614_vm11 = vcmp.eq.f32.partialorder %v613_v35, 8.507059e+37 }
 0xe4e   :  { %v2226_v9 = vpop.f32.mrf.mxu2 }
 0xe4f   :  { %1191 = vst [vmem:[%s2279_s3 + $0x48] sm:$0x3] %v2226_v9  ;;  %1196 = vrot.lane.b32.xlu2 %v2226_v9, %s1846_s29  ;;  %v1516_v14 = vmul.f32 %v1514_v6, %v2226_v9  ;;  %v1511_v59 = vmul.f32 %v2127_v32, %v2226_v9  ;;  %v1776_v11 = vpop.eup %1775 }
 0xe50   :  { %v605_v2 = vmul.f32 %v1776_v11, %v603_v54  ;;  %vm610_vm2 = vweird.f32 %v1776_v11 }
 0xe51   :  { %1522 = vrot.lane.b32.xlu1 %v1516_v14, %s1846_s29  ;;  %vm611_vm10 = vmor %vm609_vm5, %vm610_vm2 }
 0xe52   :  { %v606_v41 = vsub.f32 1.0, %v605_v2 }
 0xe54   :  { %v607_v5 = vmul.f32 %v1776_v11, %v606_v41 }
 0xe56   :  { %v608_v20 = vadd.f32 %v1776_v11, %v607_v5 }
 0xe58   :  { %v612_v56 = vsel %vm611_vm10, %v1776_v11, %v608_v20 }
 0xe59   :  { %v617_v27 = vsel %vm614_vm11, %v616_v28, %v612_v56 }
 0xea9   :  { %v1197_v49 = vpop.permute.xlu2 %1196 }
 0xeaa   :  { %v1199_v24 = vmul.f32 %v1197_v49, %v2226_v9 }
 0xeac   :  { %v1527_v39 = vsel %vm168_vm1, %v1199_v24, %v1197_v49  ;;  %v1510_v42 = vmul.f32 %v1509_v37, %v1199_v24  ;;  %v1354_v40 = vmul.f32 %v2222_v53, %v1199_v24  ;;  %v94_v53 = vld [vmem:[#allocation2 + $0x180] sm:$0xff] }
 0xead   :  { %1584 = vmatmul.f32.vlgmr.msra.gmra.mxu0 %v1527_v39  ;;  %1541 = vmatpush.msrb.mxu1 %v94_v53 }
 0xeae   :  { %1518 = vrot.lane.b32.xlu0 %v1510_v42, %s1846_s29 }
 0xeaf   :  { %1542 = vmatpush.msrb.mxu1 %v93_v57 }
 0xeb1   :  { %1543 = vmatpush.msrb.mxu1 %v92_v1 }
 0xec3   :  { %v1523_v61 = vpop.permute.xlu1 %1522 }
 0xec4   :  { %v1526_v0 = vsel %vm168_vm1, %v1511_v59, %v1523_v61 }
 0xec5   :  { %1564 = vmatmul.f32.vlgmr.msra.gmra.mxu2 %v1526_v0 }
 0xf20   :  { %v1519_v45 = vpop.permute.xlu0 %1518 }
 0xf21   :  { %v1525_v58 = vsel %vm168_vm1, %v1354_v40, %v1519_v45 }
 0xf22   :  { %1544 = vmatmul.f32.vlgmr.msrb.gmra.mxu1 %v1525_v58 }
 0xf2a   :  { %v1585_v4 = vpop.f32.mrf.mxu0 }
 0xf48   :  { %v1565_v3 = vpop.f32.mrf.mxu2 }
 0xf9f   :  { %v1545_v7 = vpop.f32.mrf.mxu1 }
 0xfa0   :  { %v1566_v8 = vadd.f32 %v1565_v3, %v1545_v7 }
 0xfa2   :  { %v1586_v32 = vadd.f32 %v1585_v4, %v1566_v8 }
 0xfa4   :  { %v1588_v10 = vadd.f32 1e-06, %v1586_v32 }
 0xfa6   :  { %1777 = vrcp.f32 %v1588_v10  ;;  %v1600_v50 = vand.u32 2147483648, %v1588_v10  ;;  %v1598_v21 = vand.u32 2147483647, %v1588_v10  ;;  %vm1594_vm8 = vweird.f32 %v1588_v10 }
 0xfa8   :  { %v1601_v25 = vor.u32 1.1754944e-38, %v1600_v50  ;;  %vm1599_vm0 = vcmp.eq.f32.partialorder %v1598_v21, 8.507059e+37 }
 0xfac   :  { %v1778_v6 = vpop.eup %1777 }
 0xfad   :  { %v1590_v9 = vmul.f32 %v1778_v6, %v1588_v10  ;;  %vm1595_vm6 = vweird.f32 %v1778_v6 }
 0xfae   :  { %vm1596_vm9 = vmor %vm1594_vm8, %vm1595_vm6 }
 0xfaf   :  { %v1591_v14 = vsub.f32 1.0, %v1590_v9 }
 0xfb1   :  { %v1592_v17 = vmul.f32 %v1778_v6, %v1591_v14 }
 0xfb3   :  { %v1593_v22 = vadd.f32 %v1778_v6, %v1592_v17 }
 0xfb5   :  { %v1597_v60 = vsel %vm1596_vm9, %v1778_v6, %v1593_v22 }
 0xfb6   :  { %v1602_v26 = vsel %vm1599_vm0, %v1601_v25, %v1597_v60 }
 0xfb7   :  { %1613 = vrot.lane.b32.xlu0 %v1602_v26, %s1850_s6  ;;  %1609 = vrot.lane.b32.xlu1 %v1602_v26, %s1846_s29 }
 0xfb8   :  { %1605 = vrot.lane.b32.xlu2 %v1602_v26, %s1847_s30 }
 0xfbf   :  { %1652 = vrot.lane.b32.xlu1 %v1646_v29, %s1846_s29  ;;  %621 = vperm.xlu0 %1726, %v617_v27  }
 0xfc0   :  { %1648 = vrot.lane.b32.xlu2 %v2057_v23, %s1857_s13 }
0x1012   :  { %v1606_v13 = vpop.permute.xlu2 %1605 }
0x1013   :  { %v1608_v33 = vmul.f32 %v1606_v13, %v1586_v32 }
0x101a   :  { %v1649_v37 = vpop.permute.xlu2 %1648 }
0x101b   :  { %v1655_v23 = vsel %vm1102_vm7, %v2051_v63, %v1649_v37 }
0x1029   :  { %v1614_v30 = vpop.permute.xlu0 %1613  ;;  %v1610_v31 = vpop.permute.xlu1 %1609 }
0x102a   :  { %v1616_v34 = vmul.f32 %v1614_v30, %v1586_v32  ;;  %v1612_v49 = vmul.f32 %v1610_v31, %v1586_v32 }
0x102c   :  { %v1617_v55 = vsel %vm216_vm4, %v1608_v33, %v1612_v49 }
0x102d   :  { %v1618_v24 = vsel %vm168_vm1, %v1617_v55, %v1616_v34 }
0x102e   :  { %v1620_v38 = vrot.slane %v1618_v24, 6 }
0x1030   :  { %1623 = vst.msk [vmem:[%s2279_s3 + $0x48] sm:$0xc] %vm1622_vm12, %v1620_v38 }
0x1031   :  { %v1653_v39 = vpop.permute.xlu1 %1652  ;;  %v622_v42 = vpop.permute.xlu0 %621 }
0x1032   :  { %v1656_v40 = vsel %vm168_vm1, %v1655_v23, %v1653_v39  ;;  %v624_v15 = vmul.f32 %v622_v42, %v2224_v62 }
0x1033   :  { %v1658_v43 = vrot.slane %v1656_v40, 4 }
0x1034   :  { %626 = vst.msk [vmem:[%s2279_s3 + $0x30] sm:$0xff] %vm625_vm3, %v624_v15 }
0x1035   :  { %1661 = vst.msk [vmem:[%s2279_s3 + $0x48] sm:$0x30] %vm1660_vm13, %v1658_v43 }
0x1036   :  { %1666 = vsyncpa [#allocation3], 1 }
0x1037   :  { %1667 = vsyncpa [#allocation5], 1 }

</bundles_post_ra>
